<compile_context>
chip_gen: v5e
topology: v5e:2x2
jax: 0.10.0
libtpu: 0.0.40
codegen_flags: <defaults>
</compile_context>

<pallas_src>
import jax
import jax.numpy as jnp
from jax.experimental import pallas as pl
from jax.experimental.pallas import tpu as pltpu

HIDDEN_DIMS = 256
NUM_CLASSES = 10
H1 = 512
H2 = 512
OUT_PAD = 128  # lane-dense padded output width (>= NUM_CLASSES)


def _round_up(x, m):
    return ((x + m - 1) // m) * m


def _choose_tb(B):
    """Pick the batch tile size TB.

    * Multiples of 16 (bf16 sublane packing); 128/256-aligned for larger tiles
      (MXU M dimension); capped at 1024 rows so per-step scratch stays small.
    * For B > 128, guarantee at least 2 grid steps so both v7x TensorCores
      (dimension_semantics="parallel") get work and the pipeline can overlap.
    * Large tiles amortize the ~0.35 us per-grid-step overhead (TB=512..1024
      gives ~0.5..1 us of MXU work per step on v6e).
    """
    if B <= 128:
        # tiny batch: a single tile; step overhead dominates regardless.
        return max(16, _round_up(B, 16))
    half = -(-B // 2)  # ceil(B/2) -> at least 2 grid steps
    if half <= 512:
        return _round_up(half, 128)
    return min(1024, _round_up(half, 256))


def _mlp_kernel(h_ref, w1_ref, b1_ref, w2_ref, b2_ref, w3_ref, b3_ref, o_ref):
    # h tile arrives as f32 straight from HBM; cast to bf16 in VMEM so no
    # separate wrapper-side HBM cast pass is needed.
    x = h_ref[...].astype(jnp.bfloat16)

    # Linear(256 -> 512) + ReLU (bias/ReLU in f32 on the VPU; bf16 for next dot)
    z1 = jnp.dot(x, w1_ref[...], preferred_element_type=jnp.float32) + b1_ref[...]
    z1 = jnp.maximum(z1, 0.0).astype(jnp.bfloat16)

    # Linear(512 -> 512) + ReLU
    z2 = jnp.dot(z1, w2_ref[...], preferred_element_type=jnp.float32) + b2_ref[...]
    z2 = jnp.maximum(z2, 0.0).astype(jnp.bfloat16)

    # Linear(512 -> 128-padded) logits; real classes are the first 10 lanes.
    o_ref[...] = (
        jnp.dot(z2, w3_ref[...], preferred_element_type=jnp.float32) + b3_ref[...]
    ).astype(o_ref.dtype)


def prepare_params(params):
    """One-time parameter preprocessing, hoisted out of the per-call path.

    Pads the 10-wide final layer to a lane-dense 128-wide layer and casts
    weights to bf16 (halves weight DMA, doubles MXU rate). Biases stay f32 so
    the bias-add / ReLU path runs in f32 on the VPU.
    """
    w1, b1, w2, b2, w3, b3 = params
    w3p = jnp.zeros((H2, OUT_PAD), jnp.float32).at[:, :NUM_CLASSES].set(w3)
    b3p = jnp.zeros((1, OUT_PAD), jnp.float32).at[:, :NUM_CLASSES].set(b3)
    return (
        w1.astype(jnp.bfloat16),
        b1.astype(jnp.float32),
        w2.astype(jnp.bfloat16),
        b2.astype(jnp.float32),
        w3p.astype(jnp.bfloat16),
        b3p,
    )


def label_predictor(h, prepared_params, *, logits_store_dtype=jnp.bfloat16):
    """h: [B, 256] float32. prepared_params: output of prepare_params().

    Returns logits [B, 10] float32.

    logits_store_dtype controls the dtype of the padded 128-lane kernel
    writeback: bf16 halves output HBM traffic (wins on v6e/v7x which sit near
    the HBM roofline); use jnp.float32 on v5e if exact-f32 storage matters.
    """
    w1b, b1f, w2b, b2f, w3b, b3f = prepared_params
    B = h.shape[0]

    TB = _choose_tb(B)
    grid = (pl.cdiv(B, TB),)  # no jnp.pad: partial last block handled by Pallas

    out = pl.pallas_call(
        _mlp_kernel,
        out_shape=jax.ShapeDtypeStruct((B, OUT_PAD), logits_store_dtype),
        grid_spec=pltpu.PrefetchScalarGridSpec(
            num_scalar_prefetch=0,
            grid=grid,
            in_specs=[
                # activation tile: advances with the batch grid index
                pl.BlockSpec((TB, HIDDEN_DIMS), lambda i: (i, 0)),
                # weights / biases: constant block index -> DMA'd once, resident
                pl.BlockSpec((HIDDEN_DIMS, H1), lambda i: (0, 0)),
                pl.BlockSpec((1, H1), lambda i: (0, 0)),
                pl.BlockSpec((H1, H2), lambda i: (0, 0)),
                pl.BlockSpec((1, H2), lambda i: (0, 0)),
                pl.BlockSpec((H2, OUT_PAD), lambda i: (0, 0)),
                pl.BlockSpec((1, OUT_PAD), lambda i: (0, 0)),
            ],
            out_specs=pl.BlockSpec((TB, OUT_PAD), lambda i: (i, 0)),
        ),
        compiler_params=pltpu.CompilerParams(
            dimension_semantics=("parallel",),   # v7x: shard batch across 2 TCs
            vmem_limit_bytes=32 * 1024 * 1024,   # headroom for TB=1024 on v5e
        ),
    )(h, w1b, b1f, w2b, b2f, w3b, b3f)

    return out[:, :NUM_CLASSES].astype(jnp.float32)


def init_params(key):
    """Deterministic synthetic parameters. Weights stored as (in, out), f32."""
    ks = jax.random.split(key, 6)

    def lin(kw, kb, fan_in, fan_out):
        bound = 1.0 / jnp.sqrt(fan_in)
        w = jax.random.uniform(kw, (fan_in, fan_out), jnp.float32, -bound, bound)
        b = jax.random.uniform(kb, (1, fan_out), jnp.float32, -bound, bound)
        return w, b

    w1, b1 = lin(ks[0], ks[1], HIDDEN_DIMS, H1)
    w2, b2 = lin(ks[2], ks[3], H1, H2)
    w3, b3 = lin(ks[4], ks[5], H2, NUM_CLASSES)
    return (w1, b1, w2, b2, w3, b3)


def _reference(h, params):
    """Plain-JAX reference mirroring the kernel math (bf16 dots, f32 accum)."""
    w1, b1, w2, b2, w3, b3 = params
    z1 = jnp.dot(h.astype(jnp.bfloat16), w1.astype(jnp.bfloat16),
                 preferred_element_type=jnp.float32) + b1
    z1 = jnp.maximum(z1, 0.0).astype(jnp.bfloat16)
    z2 = jnp.dot(z1, w2.astype(jnp.bfloat16),
                 preferred_element_type=jnp.float32) + b2
    z2 = jnp.maximum(z2, 0.0).astype(jnp.bfloat16)
    return jnp.dot(z2, w3.astype(jnp.bfloat16),
                   preferred_element_type=jnp.float32) + b3


if __name__ == "__main__":
    key = jax.random.PRNGKey(0)
    k_h, k_h2, k_p = jax.random.split(key, 3)

    params = init_params(k_p)
    prepared = prepare_params(params)  # one-time preprocessing (perf review #4)

    # Small batch: single exact-fit tile (TB = 32).
    B = 32
    h = jax.random.normal(k_h, (B, HIDDEN_DIMS), jnp.float32)
    logits = jax.block_until_ready(label_predictor(h, prepared))
    ref = _reference(h, params)
    assert logits.shape == (B, NUM_CLASSES)
    err = float(jnp.max(jnp.abs(logits - ref)))
    assert jnp.allclose(logits, ref, atol=3e-2, rtol=3e-2), err

    # Non-divisible batch: exercises the cdiv grid (2 steps, partial last block)
    # without any wrapper-side jnp.pad of h.
    B2 = 200
    h2 = jax.random.normal(k_h2, (B2, HIDDEN_DIMS), jnp.float32)
    logits2 = jax.block_until_ready(label_predictor(h2, prepared))
    ref2 = _reference(h2, params)
    assert logits2.shape == (B2, NUM_CLASSES)
    err2 = float(jnp.max(jnp.abs(logits2 - ref2)))
    assert jnp.allclose(logits2, ref2, atol=3e-2, rtol=3e-2), err2

    print("KERNEL_OK")
</pallas_src>

<mosaic_0001>
module attributes {stable_mosaic.version = 11 : i64} {
  func.func @_mlp_kernel(%arg0: i32, %arg1: memref<32x256xf32, #tpu.memory_space<vmem>>, %arg2: memref<256x512xbf16, #tpu.memory_space<vmem>>, %arg3: memref<1x512xf32, #tpu.memory_space<vmem>>, %arg4: memref<512x512xbf16, #tpu.memory_space<vmem>>, %arg5: memref<1x512xf32, #tpu.memory_space<vmem>>, %arg6: memref<512x128xbf16, #tpu.memory_space<vmem>>, %arg7: memref<1x128xf32, #tpu.memory_space<vmem>>, %arg8: memref<32x128xbf16, #tpu.memory_space<vmem>>) attributes {dimension_semantics = [#tpu.dimension_semantics<parallel>], iteration_bounds = array<i64: 1>, scalar_prefetch = 0 : i64, scratch_operands = 0 : i64, tpu.core_type = #tpu.core_type<tc>, window_params = [{transform_indices = @transform_0, window_bounds = array<i64: 32, 256>}, {pipeline_mode = #tpu.pipeline_mode<synchronous>, transform_indices = @transform_1, window_bounds = array<i64: 256, 512>}, {pipeline_mode = #tpu.pipeline_mode<synchronous>, transform_indices = @transform_2, window_bounds = array<i64: 1, 512>}, {pipeline_mode = #tpu.pipeline_mode<synchronous>, transform_indices = @transform_3, window_bounds = array<i64: 512, 512>}, {pipeline_mode = #tpu.pipeline_mode<synchronous>, transform_indices = @transform_4, window_bounds = array<i64: 1, 512>}, {pipeline_mode = #tpu.pipeline_mode<synchronous>, transform_indices = @transform_5, window_bounds = array<i64: 512, 128>}, {pipeline_mode = #tpu.pipeline_mode<synchronous>, transform_indices = @transform_6, window_bounds = array<i64: 1, 128>}, {transform_indices = @transform_7, window_bounds = array<i64: 32, 128>}]} {
    %c0 = arith.constant 0 : index
    %c0_0 = arith.constant 0 : index
    %0 = vector.load %arg1[%c0, %c0_0] : memref<32x256xf32, #tpu.memory_space<vmem>>, vector<32x256xf32>
    %1 = arith.truncf %0 : vector<32x256xf32> to vector<32x256xbf16>
    %c0_1 = arith.constant 0 : index
    %c0_2 = arith.constant 0 : index
    %2 = vector.load %arg2[%c0_1, %c0_2] : memref<256x512xbf16, #tpu.memory_space<vmem>>, vector<256x512xbf16>
    %cst = arith.constant dense<0.000000e+00> : vector<32x512xf32>
    %3 = tpu.matmul %1, %2, %cst {dimension_numbers = #tpu.dot_dimension_numbers<[1], [0], [0], [1], [0, 0, 1, 1], [], []>} : vector<32x256xbf16>, vector<256x512xbf16>, vector<32x512xf32> -> vector<32x512xf32>
    %c0_3 = arith.constant 0 : index
    %c0_4 = arith.constant 0 : index
    %4 = vector.load %arg3[%c0_3, %c0_4] : memref<1x512xf32, #tpu.memory_space<vmem>>, vector<1x512xf32>
    %5 = vector.broadcast %4 : vector<1x512xf32> to vector<32x512xf32>
    %6 = arith.addf %3, %5 : vector<32x512xf32>
    %cst_5 = arith.constant 0.000000e+00 : f32
    %7 = vector.broadcast %cst_5 : f32 to vector<32x512xf32>
    %8 = arith.maximumf %6, %7 : vector<32x512xf32>
    %9 = arith.truncf %8 : vector<32x512xf32> to vector<32x512xbf16>
    %c0_6 = arith.constant 0 : index
    %c0_7 = arith.constant 0 : index
    %10 = vector.load %arg4[%c0_6, %c0_7] : memref<512x512xbf16, #tpu.memory_space<vmem>>, vector<512x512xbf16>
    %cst_8 = arith.constant dense<0.000000e+00> : vector<32x512xf32>
    %11 = tpu.matmul %9, %10, %cst_8 {dimension_numbers = #tpu.dot_dimension_numbers<[1], [0], [0], [1], [0, 0, 1, 1], [], []>} : vector<32x512xbf16>, vector<512x512xbf16>, vector<32x512xf32> -> vector<32x512xf32>
    %c0_9 = arith.constant 0 : index
    %c0_10 = arith.constant 0 : index
    %12 = vector.load %arg5[%c0_9, %c0_10] : memref<1x512xf32, #tpu.memory_space<vmem>>, vector<1x512xf32>
    %13 = vector.broadcast %12 : vector<1x512xf32> to vector<32x512xf32>
    %14 = arith.addf %11, %13 : vector<32x512xf32>
    %cst_11 = arith.constant 0.000000e+00 : f32
    %15 = vector.broadcast %cst_11 : f32 to vector<32x512xf32>
    %16 = arith.maximumf %14, %15 : vector<32x512xf32>
    %17 = arith.truncf %16 : vector<32x512xf32> to vector<32x512xbf16>
    %c0_12 = arith.constant 0 : index
    %c0_13 = arith.constant 0 : index
    %18 = vector.load %arg6[%c0_12, %c0_13] : memref<512x128xbf16, #tpu.memory_space<vmem>>, vector<512x128xbf16>
    %cst_14 = arith.constant dense<0.000000e+00> : vector<32x128xf32>
    %19 = tpu.matmul %17, %18, %cst_14 {dimension_numbers = #tpu.dot_dimension_numbers<[1], [0], [0], [1], [0, 0, 1, 1], [], []>} : vector<32x512xbf16>, vector<512x128xbf16>, vector<32x128xf32> -> vector<32x128xf32>
    %c0_15 = arith.constant 0 : index
    %c0_16 = arith.constant 0 : index
    %20 = vector.load %arg7[%c0_15, %c0_16] : memref<1x128xf32, #tpu.memory_space<vmem>>, vector<1x128xf32>
    %21 = vector.broadcast %20 : vector<1x128xf32> to vector<32x128xf32>
    %22 = arith.addf %19, %21 : vector<32x128xf32>
    %23 = arith.truncf %22 : vector<32x128xf32> to vector<32x128xbf16>
    %c0_17 = arith.constant 0 : index
    %c0_18 = arith.constant 0 : index
    %24 = vector.load %arg8[%c0_17, %c0_18] : memref<32x128xbf16, #tpu.memory_space<vmem>>, vector<32x128xbf16>
    tpu.vector_store %arg8[%c0_17, %c0_18], %23 {strides = array<i32>} : memref<32x128xbf16, #tpu.memory_space<vmem>>, vector<32x128xbf16>,
    return
  }
  func.func @transform_0(%arg0: i32) -> (i32, i32) {
    %c0_i32 = arith.constant 0 : i32
    %c0_i32_0 = arith.constant 0 : i32
    return %arg0, %c0_i32 : i32, i32
  }
  func.func @transform_1(%arg0: i32) -> (i32, i32) {
    %c0_i32 = arith.constant 0 : i32
    %c0_i32_0 = arith.constant 0 : i32
    %c0_i32_1 = arith.constant 0 : i32
    return %c0_i32, %c0_i32_0 : i32, i32
  }
  func.func @transform_2(%arg0: i32) -> (i32, i32) {
    %c0_i32 = arith.constant 0 : i32
    %c0_i32_0 = arith.constant 0 : i32
    %c0_i32_1 = arith.constant 0 : i32
    return %c0_i32, %c0_i32_0 : i32, i32
  }
  func.func @transform_3(%arg0: i32) -> (i32, i32) {
    %c0_i32 = arith.constant 0 : i32
    %c0_i32_0 = arith.constant 0 : i32
    %c0_i32_1 = arith.constant 0 : i32
    return %c0_i32, %c0_i32_0 : i32, i32
  }
  func.func @transform_4(%arg0: i32) -> (i32, i32) {
    %c0_i32 = arith.constant 0 : i32
    %c0_i32_0 = arith.constant 0 : i32
    %c0_i32_1 = arith.constant 0 : i32
    return %c0_i32, %c0_i32_0 : i32, i32
  }
  func.func @transform_5(%arg0: i32) -> (i32, i32) {
    %c0_i32 = arith.constant 0 : i32
    %c0_i32_0 = arith.constant 0 : i32
    %c0_i32_1 = arith.constant 0 : i32
    return %c0_i32, %c0_i32_0 : i32, i32
  }
  func.func @transform_6(%arg0: i32) -> (i32, i32) {
    %c0_i32 = arith.constant 0 : i32
    %c0_i32_0 = arith.constant 0 : i32
    %c0_i32_1 = arith.constant 0 : i32
    return %c0_i32, %c0_i32_0 : i32, i32
  }
  func.func @transform_7(%arg0: i32) -> (i32, i32) {
    %c0_i32 = arith.constant 0 : i32
    %c0_i32_0 = arith.constant 0 : i32
    return %arg0, %c0_i32 : i32, i32
  }
}

</mosaic_0001>

<bundles_post_ra>
// kernel: tpu_custom_call.1
= control target key start
LH: loop header
LB: loop body
LE: loop exit
PB: predicated region body
PF: predicated region fallthrough
CT: control target
= control target key end

     0   :  { %12 = vsyncpa [#allocation3], 0  ;;  %s3681_s0 = inlined_call_operand.hbm [shape: f32[32,256], index: 0, kind: input, shape index: {}]   ;;  %s3682_s1 = inlined_call_operand.hbm [shape: bf16[256,512], index: 1, kind: input, shape index: {}]   ;;  %s3683_s2 = inlined_call_operand.hbm [shape: f32[1,512], index: 2, kind: input, shape index: {}]   ;;  %s3684_s3 = inlined_call_operand.hbm [shape: bf16[512,512], index: 3, kind: input, shape index: {}]   ;;  %s3685_s4 = inlined_call_operand.hbm [shape: f32[1,512], index: 4, kind: input, shape index: {}]   ;;  %s3686_s5 = inlined_call_operand.hbm [shape: bf16[512,128], index: 5, kind: input, shape index: {}]   ;;  %s3687_s6 = inlined_call_operand.vmem [shape: f32[1,128], index: 6, kind: input, shape index: {}]   ;;  %s3688_s7 = inlined_call_operand.hbm [shape: bf16[32,128], index: 7, kind: output, shape index: {}]  }
   0x1   :  { %13 = vsyncpa [#allocation6], 0 }
   0x2   :  { %14 = vsyncpa [#allocation9], 0 }
   0x3   :  { %15 = vsyncpa [#allocation12], 0 }
   0x4   :  { %16 = vsyncpa [#allocation4], 0  ;;  %s34_s26 = sshll.u32 %s3682_s1, 4  ;;  %s3492_s27 = smov [#allocation5]   ;;  %s35_s26 = int_to_ptr.hbm [resolvable:$true] %s34_s26 }
   0x5   :  { %s36_s28 = sshll.u32 %s3492_s27, 4  ;;  %s58_s8 = sshll.u32 %s3684_s3, 4  ;;  %s37_s28 = int_to_ptr.vmem [resolvable:$true] %s36_s28  ;;  %s59_s8 = int_to_ptr.hbm [resolvable:$true] %s58_s8 }
   0x6   :  { %s3493_s9 = smov 256   ;;  %s3494_s10 = smov 16  }
   0x7   :  { %42 = dma.hbm_to_vmem [thread:$0]  %s35_s26, 8192, %s37_s28, [#allocation6], %s3493_s9, %s3493_s9, %s3494_s10  }
   0x8   :  { %s3495_s11 = smov [#allocation8]   ;;  %s21_s15 = sshll.u32 %s3681_s0, 4  ;;  %s22_s15 = int_to_ptr.hbm [resolvable:$true] %s21_s15 }
   0x9   :  { %s60_s12 = sshll.u32 %s3495_s11, 4  ;;  %s48_s17 = sshll.u32 %s3683_s2, 4  ;;  %s61_s12 = int_to_ptr.vmem [resolvable:$true] %s60_s12  ;;  %s49_s17 = int_to_ptr.hbm [resolvable:$true] %s48_s17 }
   0xa   :  { %66 = dma.hbm_to_vmem [thread:$0]  %s59_s8, 16384, %s61_s12, [#allocation9], %s3493_s9, %s3493_s9, %s3494_s10  }
   0xb   :  { %s3496_s18 = smov [#allocation2]   ;;  %s3497_s3 = smov [#allocation7]  }
   0xc   :  { %s23_s19 = sshll.u32 %s3496_s18, 4  ;;  %s50_s20 = sshll.u32 %s3497_s3, 4  ;;  %s24_s19 = int_to_ptr.vmem [resolvable:$true] %s23_s19  ;;  %s51_s20 = int_to_ptr.vmem [resolvable:$true] %s50_s20 }
   0xd   :  { %29 = dma.hbm_to_vmem [thread:$0]  %s22_s15, 1024, %s24_s19, [#allocation3], %s3493_s9, %s3493_s9, %s3494_s10  }
   0xe   :  { %s72_s23 = sshll.u32 %s3685_s4, 4  ;;  %s82_s25 = sshll.u32 %s3686_s5, 4  ;;  %s73_s23 = int_to_ptr.hbm [resolvable:$true] %s72_s23  ;;  %s83_s25 = int_to_ptr.hbm [resolvable:$true] %s82_s25 }
   0xf   :  { %53 = dma.hbm_to_vmem [thread:$0]  %s49_s17, 64, %s51_s20, [#allocation6]  }
  0x10   :  { %s3498_s26 = smov [#allocation10]   ;;  %s3499_s27 = smov [#allocation11]  }
  0x11   :  { %s74_s2 = sshll.u32 %s3498_s26, 4  ;;  %s84_s28 = sshll.u32 %s3499_s27, 4  ;;  %s75_s2 = int_to_ptr.vmem [resolvable:$true] %s74_s2  ;;  %s85_s28 = int_to_ptr.vmem [resolvable:$true] %s84_s28 }
  0x12   :  { %77 = dma.hbm_to_vmem [thread:$0]  %s73_s23, 64, %s75_s2, [#allocation9]  }
  0x13   :  { %s3500_s29 = smov 64   ;;  %s3501_s30 = smov 4  }
  0x14   :  { %90 = dma.hbm_to_vmem [thread:$0]  %s83_s25, 4096, %s85_s28, [#allocation12], %s3500_s29, %s3500_s29, %s3501_s30  }
  0x15   :  { %3482 = dma.done.wait [#allocation3], 1024  }
  0x16   :  { %3483 = vsyncadd [#allocation3], 4294966272 }
  0x17   :  { %3484 = dma.done.wait [#allocation6], 8256  }
  0x18   :  { %3485 = vsyncadd [#allocation6], 4294959040 }
  0x19   :  { %3486 = dma.done.wait [#allocation9], 16448  }
  0x1a   :  { %3487 = vsyncadd [#allocation9], 4294950848 }
  0x1b   :  { %3488 = dma.done.wait [#allocation12], 4096  }
  0x1c   :  { %3489 = vsyncadd [#allocation12], 4294963200  ;;  %v2285_v0 = vld [vmem:[#allocation5 + $0xe0] sm:$0xf]  ;;  %v3097_v1 = vld [vmem:[#allocation5 + $0xec] sm:$0xf0] }
  0x1d   :  { %v2413_v2 = vld [vmem:[#allocation5 + $0x1e0] sm:$0xf]  ;;  %v2286_v3 = vor.u32 %v3097_v1, %v2285_v0  ;;  %v3129_v4 = vld [vmem:[#allocation5 + $0x1ec] sm:$0xf0]  ;;  %v3095_v5 = vld [vmem:[#allocation5 + $0xe4] sm:$0xf] }
  0x1e   :  { %v2287_v6 = vld [vmem:[#allocation5 + $0xf0] sm:$0xf0]  ;;  %v2414_v7 = vor.u32 %v3129_v4, %v2413_v2  ;;  %v3127_v9 = vld [vmem:[#allocation5 + $0x1e4] sm:$0xf]  ;;  %v2269_v11 = vld [vmem:[#allocation5 + $0xc0] sm:$0xf] }
  0x1f   :  { %v2290_v8 = vor.u32 %v3095_v5, %v2287_v6  ;;  %v2415_v10 = vld [vmem:[#allocation5 + $0x1f0] sm:$0xf0]  ;;  %523 = vmatpush.bf16.msra.mxu0 %v2286_v3  ;;  %v3093_v13 = vld [vmem:[#allocation5 + $0xcc] sm:$0xf0]  ;;  %v2397_v14 = vld [vmem:[#allocation5 + $0x1c0] sm:$0xf] }
  0x20   :  { %v2418_v12 = vor.u32 %v3127_v9, %v2415_v10  ;;  %v3125_v15 = vld [vmem:[#allocation5 + $0x1cc] sm:$0xf0]  ;;  %542 = vmatpush.bf16.msra.mxu1 %v2414_v7  ;;  %v2270_v16 = vor.u32 %v3093_v13, %v2269_v11  ;;  %v3091_v18 = vld [vmem:[#allocation5 + $0xc4] sm:$0xf]  ;;  %v2271_v19 = vld [vmem:[#allocation5 + $0xd0] sm:$0xf0] }
  0x21   :  { %561 = vmatpush.bf16.msra.mxu2 %v2290_v8  ;;  %v2398_v17 = vor.u32 %v3125_v15, %v2397_v14  ;;  %v3123_v20 = vld [vmem:[#allocation5 + $0x1c4] sm:$0xf]  ;;  %v2274_v21 = vor.u32 %v3091_v18, %v2271_v19  ;;  %v2399_v22 = vld [vmem:[#allocation5 + $0x1d0] sm:$0xf0]  ;;  %v2253_v23 = vld [vmem:[#allocation5 + $0xa0] sm:$0xf] }
  0x22   :  { %580 = vmatpush.bf16.msra.mxu3 %v2418_v12  ;;  %v3089_v24 = vld [vmem:[#allocation5 + $0xac] sm:$0xf0]  ;;  %v2402_v25 = vor.u32 %v3123_v20, %v2399_v22  ;;  %v2381_v26 = vld [vmem:[#allocation5 + $0x1a0] sm:$0xf]  ;;  %v3087_v28 = vld [vmem:[#allocation5 + $0xa4] sm:$0xf] }
  0x23   :  { %v3121_v27 = vld [vmem:[#allocation5 + $0x1ac] sm:$0xf0]  ;;  %524 = vmatpush.bf16.msra.mxu0 %v2270_v16  ;;  %v2254_v29 = vor.u32 %v3089_v24, %v2253_v23  ;;  %v2255_v30 = vld [vmem:[#allocation5 + $0xb0] sm:$0xf0]  ;;  %v3119_v31 = vld [vmem:[#allocation5 + $0x1a4] sm:$0xf] }
  0x24   :  { %v2383_v32 = vld [vmem:[#allocation5 + $0x1b0] sm:$0xf0]  ;;  %543 = vmatpush.bf16.msra.mxu1 %v2398_v17  ;;  %v2382_v33 = vor.u32 %v3121_v27, %v2381_v26  ;;  %v2258_v34 = vor.u32 %v3087_v28, %v2255_v30  ;;  %v2237_v35 = vld [vmem:[#allocation5 + $0x80] sm:$0xf]  ;;  %v3085_v36 = vld [vmem:[#allocation5 + $0x8c] sm:$0xf0] }
  0x25   :  { %562 = vmatpush.bf16.msra.mxu2 %v2274_v21  ;;  %v2365_v37 = vld [vmem:[#allocation5 + $0x180] sm:$0xf]  ;;  %v2386_v38 = vor.u32 %v3119_v31, %v2383_v32  ;;  %v3117_v39 = vld [vmem:[#allocation5 + $0x18c] sm:$0xf0]  ;;  %v3083_v40 = vld [vmem:[#allocation5 + $0x84] sm:$0xf]  ;;  %v2238_v44 = vor.u32 %v3085_v36, %v2237_v35 }
  0x26   :  { %581 = vmatpush.bf16.msra.mxu3 %v2402_v25  ;;  %v2239_v41 = vld [vmem:[#allocation5 + $0x90] sm:$0xf0]  ;;  %v3115_v42 = vld [vmem:[#allocation5 + $0x184] sm:$0xf]  ;;  %v2366_v45 = vor.u32 %v3117_v39, %v2365_v37  ;;  %v2221_v47 = vld [vmem:[#allocation5 + $0x60] sm:$0xf] }
  0x27   :  { %v2367_v43 = vld [vmem:[#allocation5 + $0x190] sm:$0xf0]  ;;  %525 = vmatpush.bf16.msra.mxu0 %v2254_v29  ;;  %v2242_v46 = vor.u32 %v3083_v40, %v2239_v41  ;;  %v3081_v48 = vld [vmem:[#allocation5 + $0x6c] sm:$0xf0]  ;;  %v2349_v49 = vld [vmem:[#allocation5 + $0x160] sm:$0xf] }
  0x28   :  { %544 = vmatpush.bf16.msra.mxu1 %v2382_v33  ;;  %v2370_v50 = vor.u32 %v3115_v42, %v2367_v43  ;;  %v3113_v51 = vld [vmem:[#allocation5 + $0x16c] sm:$0xf0]  ;;  %v3079_v52 = vld [vmem:[#allocation5 + $0x64] sm:$0xf]  ;;  %v2223_v53 = vld [vmem:[#allocation5 + $0x70] sm:$0xf0]  ;;  %v2222_v56 = vor.u32 %v3081_v48, %v2221_v47 }
  0x29   :  { %563 = vmatpush.bf16.msra.mxu2 %v2258_v34  ;;  %v3111_v54 = vld [vmem:[#allocation5 + $0x164] sm:$0xf]  ;;  %v2351_v55 = vld [vmem:[#allocation5 + $0x170] sm:$0xf0]  ;;  %v2350_v57 = vor.u32 %v3113_v51, %v2349_v49  ;;  %v2226_v58 = vor.u32 %v3079_v52, %v2223_v53  ;;  %v2205_v59 = vld [vmem:[#allocation5 + $0x40] sm:$0xf] }
  0x2a   :  { %582 = vmatpush.bf16.msra.mxu3 %v2386_v38  ;;  %v3077_v60 = vld [vmem:[#allocation5 + $0x4c] sm:$0xf0]  ;;  %v2333_v61 = vld [vmem:[#allocation5 + $0x140] sm:$0xf]  ;;  %v2354_v62 = vor.u32 %v3111_v54, %v2351_v55  ;;  %v3075_v0 = vld [vmem:[#allocation5 + $0x44] sm:$0xf] }
  0x2b   :  { %526 = vmatpush.bf16.msra.mxu0 %v2238_v44  ;;  %v3109_v63 = vld [vmem:[#allocation5 + $0x14c] sm:$0xf0]  ;;  %v2207_v1 = vld [vmem:[#allocation5 + $0x50] sm:$0xf0]  ;;  %v3107_v2 = vld [vmem:[#allocation5 + $0x144] sm:$0xf]  ;;  %v2206_v4 = vor.u32 %v3077_v60, %v2205_v59 }
  0x2c   :  { %545 = vmatpush.bf16.msra.mxu1 %v2366_v45  ;;  %v2335_v3 = vld [vmem:[#allocation5 + $0x150] sm:$0xf0]  ;;  %v2334_v5 = vor.u32 %v3109_v63, %v2333_v61  ;;  %v2210_v6 = vor.u32 %v3075_v0, %v2207_v1  ;;  %v2189_v7 = vld [vmem:[#allocation5 + $0x20] sm:$0xf]  ;;  %v3073_v8 = vld [vmem:[#allocation5 + $0x2c] sm:$0xf0] }
  0x2d   :  { %564 = vmatpush.bf16.msra.mxu2 %v2242_v46  ;;  %v2317_v9 = vld [vmem:[#allocation5 + $0x120] sm:$0xf]  ;;  %v2338_v10 = vor.u32 %v3107_v2, %v2335_v3  ;;  %v3105_v11 = vld [vmem:[#allocation5 + $0x12c] sm:$0xf0]  ;;  %v3071_v12 = vld [vmem:[#allocation5 + $0x24] sm:$0xf]  ;;  %v2190_v16 = vor.u32 %v3073_v8, %v2189_v7 }
  0x2e   :  { %583 = vmatpush.bf16.msra.mxu3 %v2370_v50  ;;  %v2191_v13 = vld [vmem:[#allocation5 + $0x30] sm:$0xf0]  ;;  %v3103_v14 = vld [vmem:[#allocation5 + $0x124] sm:$0xf]  ;;  %v2173_v17 = vld [vmem:[#allocation5] sm:$0xf]  ;;  %v2318_v19 = vor.u32 %v3105_v11, %v2317_v9 }
  0x2f   :  { %527 = vmatpush.bf16.msra.mxu0 %v2222_v56  ;;  %v2319_v15 = vld [vmem:[#allocation5 + $0x130] sm:$0xf0]  ;;  %v3069_v18 = vld [vmem:[#allocation5 + $0xc] sm:$0xf0]  ;;  %v2194_v20 = vor.u32 %v3071_v12, %v2191_v13  ;;  %v2301_v21 = vld [vmem:[#allocation5 + $0x100] sm:$0xf] }
  0x30   :  { %546 = vmatpush.bf16.msra.mxu1 %v2350_v57  ;;  %v3101_v22 = vld [vmem:[#allocation5 + $0x10c] sm:$0xf0]  ;;  %v3067_v23 = vld [vmem:[#allocation5 + $0x4] sm:$0xf]  ;;  %v2322_v24 = vor.u32 %v3103_v14, %v2319_v15  ;;  %v2175_v25 = vld [vmem:[#allocation5 + $0x10] sm:$0xf0]  ;;  %v2174_v31 = vor.u32 %v3069_v18, %v2173_v17 }
  0x31   :  { %565 = vmatpush.bf16.msra.mxu2 %v2226_v58  ;;  %v3099_v26 = vld [vmem:[#allocation5 + $0x104] sm:$0xf]  ;;  %v2303_v27 = vld [vmem:[#allocation5 + $0x110] sm:$0xf0]  ;;  %v3096_v29 = vld [vmem:[#allocation5 + $0xec] sm:$0xf]  ;;  %v2302_v35 = vor.u32 %v3101_v22, %v2301_v21  ;;  %v2178_v36 = vor.u32 %v3067_v23, %v2175_v25 }
  0x32   :  { %584 = vmatpush.bf16.msra.mxu3 %v2354_v62  ;;  %v117_v28 = vld [vmem:[#allocation2] sm:$0xff]  ;;  %v2295_v30 = vld [vmem:[#allocation5 + $0xf8] sm:$0xf0]  ;;  %v119_v32 = vld [vmem:[#allocation2 + $0x10] sm:$0xff]  ;;  %v2306_v39 = vor.u32 %v3099_v26, %v2303_v27  ;;  %s2155_s11 = sshll.u32 %s3688_s7, 4  ;;  %s2156_s11 = int_to_ptr.hbm [resolvable:$true] %s2155_s11 }
  0x33   :  { %528 = vmatpush.bf16.msra.mxu0 %v2206_v4  ;;  %v2421_v33 = vld [vmem:[#allocation5 + $0x1e8] sm:$0xf]  ;;  %v3130_v34 = vld [vmem:[#allocation5 + $0x1f4] sm:$0xf0]  ;;  %v2298_v40 = vor.u32 %v3096_v29, %v2295_v30  ;;  %v3128_v43 = vld [vmem:[#allocation5 + $0x1ec] sm:$0xf]  ;;  %v3564_v44 = vpack.c.bf16 %v119_v32, %v117_v28 }
  0x34   :  { %547 = vmatpush.bf16.msra.mxu1 %v2334_v5  ;;  %v118_v37 = vld [vmem:[#allocation2 + $0x8] sm:$0xff]  ;;  %v120_v38 = vld [vmem:[#allocation2 + $0x18] sm:$0xff]  ;;  %v2422_v45 = vor.u32 %v3130_v34, %v2421_v33  ;;  %v123_v23 = vld [vmem:[#allocation2 + $0x30] sm:$0xff] }
  0x35   :  { %566 = vmatpush.bf16.msra.mxu2 %v2210_v6  ;;  %v2293_v41 = vld [vmem:[#allocation5 + $0xe8] sm:$0xf]  ;;  %v3098_v42 = vld [vmem:[#allocation5 + $0xf4] sm:$0xf0]  ;;  %v2423_v46 = vld [vmem:[#allocation5 + $0x1f8] sm:$0xf0]  ;;  %v3566_v49 = vpack.c.bf16 %v120_v38, %v118_v37 }
  0x36   :  { %585 = vmatpush.bf16.msra.mxu3 %v2338_v10  ;;  %v3092_v47 = vld [vmem:[#allocation5 + $0xcc] sm:$0xf]  ;;  %v2279_v48 = vld [vmem:[#allocation5 + $0xd8] sm:$0xf0]  ;;  %v2405_v50 = vld [vmem:[#allocation5 + $0x1c8] sm:$0xf]  ;;  %v2294_v52 = vor.u32 %v3098_v42, %v2293_v41  ;;  %v2426_v53 = vor.u32 %v3128_v43, %v2423_v46 }
  0x37   :  { %529 = vmatpush.bf16.msra.mxu0 %v2190_v16  ;;  %v3126_v51 = vld [vmem:[#allocation5 + $0x1d4] sm:$0xf0]  ;;  %v2282_v54 = vor.u32 %v3092_v47, %v2279_v48  ;;  %v2277_v55 = vld [vmem:[#allocation5 + $0xc8] sm:$0xf]  ;;  %v3124_v57 = vld [vmem:[#allocation5 + $0x1cc] sm:$0xf] }
  0x38   :  { %548 = vmatpush.bf16.msra.mxu1 %v2318_v19  ;;  %v3094_v56 = vld [vmem:[#allocation5 + $0xd4] sm:$0xf0]  ;;  %v2406_v58 = vor.u32 %v3126_v51, %v2405_v50  ;;  %v2407_v59 = vld [vmem:[#allocation5 + $0x1d8] sm:$0xf0]  ;;  %v3088_v60 = vld [vmem:[#allocation5 + $0xac] sm:$0xf] }
  0x39   :  { %567 = vmatpush.bf16.msra.mxu2 %v2194_v20  ;;  %v2263_v61 = vld [vmem:[#allocation5 + $0xb8] sm:$0xf0]  ;;  %v2389_v62 = vld [vmem:[#allocation5 + $0x1a8] sm:$0xf]  ;;  %v3122_v63 = vld [vmem:[#allocation5 + $0x1b4] sm:$0xf0]  ;;  %v2278_v0 = vor.u32 %v3094_v56, %v2277_v55  ;;  %v2410_v1 = vor.u32 %v3124_v57, %v2407_v59 }
  0x3a   :  { %586 = vmatpush.bf16.msra.mxu3 %v2322_v24  ;;  %v2266_v2 = vor.u32 %v3088_v60, %v2263_v61  ;;  %v2261_v3 = vld [vmem:[#allocation5 + $0xa8] sm:$0xf]  ;;  %v3090_v4 = vld [vmem:[#allocation5 + $0xb4] sm:$0xf0]  ;;  %v3120_v5 = vld [vmem:[#allocation5 + $0x1ac] sm:$0xf]  ;;  %v2390_v6 = vor.u32 %v3122_v63, %v2389_v62 }
  0x3b   :  { %530 = vmatpush.bf16.msra.mxu0 %v2174_v31  ;;  %v2391_v7 = vld [vmem:[#allocation5 + $0x1b8] sm:$0xf0]  ;;  %v3084_v8 = vld [vmem:[#allocation5 + $0x8c] sm:$0xf]  ;;  %v2373_v10 = vld [vmem:[#allocation5 + $0x188] sm:$0xf]  ;;  %v2262_v12 = vor.u32 %v3090_v4, %v2261_v3 }
  0x3c   :  { %549 = vmatpush.bf16.msra.mxu1 %v2302_v35  ;;  %v2247_v9 = vld [vmem:[#allocation5 + $0x98] sm:$0xf0]  ;;  %v3118_v11 = vld [vmem:[#allocation5 + $0x194] sm:$0xf0]  ;;  %v2245_v13 = vld [vmem:[#allocation5 + $0x88] sm:$0xf]  ;;  %v2394_v14 = vor.u32 %v3120_v5, %v2391_v7 }
  0x3d   :  { %568 = vmatpush.bf16.msra.mxu2 %v2178_v36  ;;  %v2250_v15 = vor.u32 %v3084_v8, %v2247_v9  ;;  %v3086_v16 = vld [vmem:[#allocation5 + $0x94] sm:$0xf0]  ;;  %v3116_v17 = vld [vmem:[#allocation5 + $0x18c] sm:$0xf]  ;;  %v2375_v18 = vld [vmem:[#allocation5 + $0x198] sm:$0xf0]  ;;  %v2374_v19 = vor.u32 %v3118_v11, %v2373_v10 }
  0x3e   :  { %587 = vmatpush.bf16.msra.mxu3 %v2306_v39  ;;  %531 = vmatmul.bf16.vlgmr.msra.gmra.mxu0 %v3564_v44  ;;  %v121_v20 = vld [vmem:[#allocation2 + $0x20] sm:$0xff]  ;;  %v3080_v21 = vld [vmem:[#allocation5 + $0x6c] sm:$0xf]  ;;  %v2231_v22 = vld [vmem:[#allocation5 + $0x78] sm:$0xf0]  ;;  %v2246_v26 = vor.u32 %v3086_v16, %v2245_v13  ;;  %v2378_v30 = vor.u32 %v3116_v17, %v2375_v18 }
  0x3f   :  { %550 = vmatmul.bf16.vlgmr.msra.gmra.mxu1 %v3566_v49  ;;  %599 = vmatpush.bf16.msrb.mxu0 %v2294_v52  ;;  %v2357_v24 = vld [vmem:[#allocation5 + $0x168] sm:$0xf]  ;;  %v3114_v25 = vld [vmem:[#allocation5 + $0x174] sm:$0xf0]  ;;  %v2234_v31 = vor.u32 %v3080_v21, %v2231_v22  ;;  %v3112_v33 = vld [vmem:[#allocation5 + $0x16c] sm:$0xf]  ;;  %v3572_v34 = vpack.c.bf16 %v123_v23, %v121_v20 }
  0x40   :  { %618 = vmatpush.bf16.msrb.mxu1 %v2422_v45  ;;  %569 = vmatmul.bf16.vlgmr.msra.gmra.mxu2 %v3564_v44  ;;  %v122_v27 = vld [vmem:[#allocation2 + $0x28] sm:$0xff]  ;;  %v124_v28 = vld [vmem:[#allocation2 + $0x38] sm:$0xff]  ;;  %v2358_v35 = vor.u32 %v3114_v25, %v2357_v24  ;;  %v2669_v5 = vld [vmem:[#allocation8 + $0x1e0] sm:$0xf] }
  0x41   :  { %637 = vmatpush.bf16.msrb.mxu2 %v2298_v40  ;;  %588 = vmatmul.bf16.vlgmr.msra.gmra.mxu3 %v3566_v49  ;;  %v2229_v29 = vld [vmem:[#allocation5 + $0x68] sm:$0xf]  ;;  %v3082_v32 = vld [vmem:[#allocation5 + $0x74] sm:$0xf0]  ;;  %v2359_v36 = vld [vmem:[#allocation5 + $0x178] sm:$0xf0]  ;;  %v3574_v39 = vpack.c.bf16 %v124_v28, %v122_v27 }
  0x42   :  { %656 = vmatpush.bf16.msrb.mxu3 %v2426_v53  ;;  %v3076_v37 = vld [vmem:[#allocation5 + $0x4c] sm:$0xf]  ;;  %v2215_v38 = vld [vmem:[#allocation5 + $0x58] sm:$0xf0]  ;;  %v2341_v40 = vld [vmem:[#allocation5 + $0x148] sm:$0xf]  ;;  %v2230_v42 = vor.u32 %v3082_v32, %v2229_v29  ;;  %v2362_v43 = vor.u32 %v3112_v33, %v2359_v36 }
  0x43   :  { %600 = vmatpush.bf16.msrb.mxu0 %v2278_v0  ;;  %v3110_v41 = vld [vmem:[#allocation5 + $0x154] sm:$0xf0]  ;;  %v2218_v45 = vor.u32 %v3076_v37, %v2215_v38  ;;  %v2213_v46 = vld [vmem:[#allocation5 + $0x48] sm:$0xf]  ;;  %v3108_v48 = vld [vmem:[#allocation5 + $0x14c] sm:$0xf] }
  0x44   :  { %619 = vmatpush.bf16.msrb.mxu1 %v2406_v58  ;;  %v3078_v47 = vld [vmem:[#allocation5 + $0x54] sm:$0xf0]  ;;  %v2342_v50 = vor.u32 %v3110_v41, %v2341_v40  ;;  %v2343_v51 = vld [vmem:[#allocation5 + $0x158] sm:$0xf0]  ;;  %v3072_v52 = vld [vmem:[#allocation5 + $0x2c] sm:$0xf] }
  0x45   :  { %638 = vmatpush.bf16.msrb.mxu2 %v2282_v54  ;;  %v2199_v53 = vld [vmem:[#allocation5 + $0x38] sm:$0xf0]  ;;  %v2325_v54 = vld [vmem:[#allocation5 + $0x128] sm:$0xf]  ;;  %v3106_v55 = vld [vmem:[#allocation5 + $0x134] sm:$0xf0]  ;;  %v2214_v56 = vor.u32 %v3078_v47, %v2213_v46  ;;  %v2346_v57 = vor.u32 %v3108_v48, %v2343_v51 }
  0x46   :  { %657 = vmatpush.bf16.msrb.mxu3 %v2410_v1  ;;  %v2202_v58 = vor.u32 %v3072_v52, %v2199_v53  ;;  %v2197_v59 = vld [vmem:[#allocation5 + $0x28] sm:$0xf]  ;;  %v3074_v60 = vld [vmem:[#allocation5 + $0x34] sm:$0xf0]  ;;  %v3104_v61 = vld [vmem:[#allocation5 + $0x12c] sm:$0xf]  ;;  %v2326_v62 = vor.u32 %v3106_v55, %v2325_v54 }
  0x47   :  { %601 = vmatpush.bf16.msrb.mxu0 %v2262_v12  ;;  %v2327_v63 = vld [vmem:[#allocation5 + $0x138] sm:$0xf0]  ;;  %v3068_v0 = vld [vmem:[#allocation5 + $0xc] sm:$0xf]  ;;  %v3102_v3 = vld [vmem:[#allocation5 + $0x114] sm:$0xf0]  ;;  %v2198_v4 = vor.u32 %v3074_v60, %v2197_v59 }
  0x48   :  { %620 = vmatpush.bf16.msrb.mxu1 %v2390_v6  ;;  %v2183_v1 = vld [vmem:[#allocation5 + $0x18] sm:$0xf0]  ;;  %v3193_v6 = vld [vmem:[#allocation8 + $0x1ec] sm:$0xf0]  ;;  %v2330_v7 = vor.u32 %v3104_v61, %v2327_v63  ;;  %v2181_v9 = vld [vmem:[#allocation5 + $0x8] sm:$0xf] }
  0x49   :  { %639 = vmatpush.bf16.msrb.mxu2 %v2266_v2  ;;  %v2309_v2 = vld [vmem:[#allocation5 + $0x108] sm:$0xf]  ;;  %v2186_v8 = vor.u32 %v3068_v0, %v2183_v1  ;;  %v3070_v10 = vld [vmem:[#allocation5 + $0x14] sm:$0xf0]  ;;  %v3100_v11 = vld [vmem:[#allocation5 + $0x10c] sm:$0xf]  ;;  %v2670_v16 = vor.u32 %v3193_v6, %v2669_v5 }
  0x4a   :  { %658 = vmatpush.bf16.msrb.mxu3 %v2394_v14  ;;  %v2310_v12 = vor.u32 %v3102_v3, %v2309_v2  ;;  %v2311_v13 = vld [vmem:[#allocation5 + $0x118] sm:$0xf0]  ;;  %v2541_v14 = vld [vmem:[#allocation8 + $0xe0] sm:$0xf]  ;;  %v2182_v17 = vor.u32 %v3070_v10, %v2181_v9  ;;  %v3157_v21 = vld [vmem:[#allocation8 + $0xcc] sm:$0xf0] }
  0x4b   :  { %602 = vmatpush.bf16.msrb.mxu0 %v2246_v26  ;;  %v2314_v18 = vor.u32 %v3100_v11, %v2311_v13  ;;  %v2525_v20 = vld [vmem:[#allocation8 + $0xc0] sm:$0xf]  ;;  %v3189_v23 = vld [vmem:[#allocation8 + $0x1cc] sm:$0xf0]  ;;  %v3159_v61 = vld [vmem:[#allocation8 + $0xe4] sm:$0xf] }
  0x4c   :  { %621 = vmatpush.bf16.msrb.mxu1 %v2374_v19  ;;  %v2653_v22 = vld [vmem:[#allocation8 + $0x1c0] sm:$0xf]  ;;  %v2526_v24 = vor.u32 %v3157_v21, %v2525_v20  ;;  %v3153_v27 = vld [vmem:[#allocation8 + $0xac] sm:$0xf0]  ;;  %v2543_v63 = vld [vmem:[#allocation8 + $0xf0] sm:$0xf0] }
  0x4d   :  { %640 = vmatpush.bf16.msrb.mxu2 %v2250_v15  ;;  %v3161_v15 = vld [vmem:[#allocation8 + $0xec] sm:$0xf0]  ;;  %v2654_v25 = vor.u32 %v3189_v23, %v2653_v22  ;;  %v2509_v26 = vld [vmem:[#allocation8 + $0xa0] sm:$0xf]  ;;  %v2546_v0 = vor.u32 %v3159_v61, %v2543_v63  ;;  %v3155_v6 = vld [vmem:[#allocation8 + $0xc4] sm:$0xf] }
  0x4e   :  { %659 = vmatpush.bf16.msrb.mxu3 %v2378_v30  ;;  %536 = vmatmul.bf16.gmra.mxu0 %v3572_v34  ;;  %v2542_v19 = vor.u32 %v3161_v15, %v2541_v14  ;;  %v2510_v28 = vor.u32 %v3153_v27, %v2509_v26  ;;  %v2493_v29 = vld [vmem:[#allocation8 + $0x80] sm:$0xf]  ;;  %v3149_v30 = vld [vmem:[#allocation8 + $0x8c] sm:$0xf0]  ;;  %v2671_v14 = vld [vmem:[#allocation8 + $0x1f0] sm:$0xf0] }
  0x4f   :  { %555 = vmatmul.bf16.gmra.mxu1 %v3574_v39  ;;  %603 = vmatpush.bf16.msrb.mxu0 %v2230_v42  ;;  %v2637_v32 = vld [vmem:[#allocation8 + $0x1a0] sm:$0xf]  ;;  %v3181_v38 = vld [vmem:[#allocation8 + $0x18c] sm:$0xf0]  ;;  %v2511_v20 = vld [vmem:[#allocation8 + $0xb0] sm:$0xf0] }
  0x50   :  { %622 = vmatpush.bf16.msrb.mxu1 %v2358_v35  ;;  %574 = vmatmul.bf16.gmra.mxu2 %v3572_v34  ;;  %v3145_v35 = vld [vmem:[#allocation8 + $0x6c] sm:$0xf0]  ;;  %v2621_v37 = vld [vmem:[#allocation8 + $0x180] sm:$0xf]  ;;  %v2655_v27 = vld [vmem:[#allocation8 + $0x1d0] sm:$0xf0] }
  0x51   :  { %641 = vmatpush.bf16.msrb.mxu2 %v2234_v31  ;;  %593 = vmatmul.bf16.gmra.mxu3 %v3574_v39  ;;  %v2494_v31 = vor.u32 %v3149_v30, %v2493_v29  ;;  %v2622_v40 = vor.u32 %v3181_v38, %v2621_v37  ;;  %v2461_v41 = vld [vmem:[#allocation8 + $0x40] sm:$0xf]  ;;  %v3141_v42 = vld [vmem:[#allocation8 + $0x4c] sm:$0xf0]  ;;  %v2463_v61 = vld [vmem:[#allocation8 + $0x50] sm:$0xf0] }
  0x52   :  { %660 = vmatpush.bf16.msrb.mxu3 %v2362_v43  ;;  %v2462_v43 = vor.u32 %v3141_v42, %v2461_v41  ;;  %v3177_v46 = vld [vmem:[#allocation8 + $0x16c] sm:$0xf0]  ;;  %v2429_v53 = vld [vmem:[#allocation8] sm:$0xf]  ;;  %v2639_v41 = vld [vmem:[#allocation8 + $0x1b0] sm:$0xf0] }
  0x53   :  { %604 = vmatpush.bf16.msrb.mxu0 %v2214_v56  ;;  %v3137_v47 = vld [vmem:[#allocation8 + $0x2c] sm:$0xf0]  ;;  %v2573_v56 = vld [vmem:[#allocation8 + $0x120] sm:$0xf] }
  0x54   :  { %623 = vmatpush.bf16.msrb.mxu1 %v2342_v50  ;;  %v2589_v50 = vld [vmem:[#allocation8 + $0x140] sm:$0xf]  ;;  %v3173_v51 = vld [vmem:[#allocation8 + $0x14c] sm:$0xf0] }
  0x55   :  { %642 = vmatpush.bf16.msrb.mxu2 %v2218_v45  ;;  %v2605_v45 = vld [vmem:[#allocation8 + $0x160] sm:$0xf]  ;;  %v2590_v52 = vor.u32 %v3173_v51, %v2589_v50  ;;  %v3133_v54 = vld [vmem:[#allocation8 + $0xc] sm:$0xf0] }
  0x56   :  { %661 = vmatpush.bf16.msrb.mxu3 %v2346_v57  ;;  %v2430_v55 = vor.u32 %v3133_v54, %v2429_v53  ;;  %v3169_v57 = vld [vmem:[#allocation8 + $0x12c] sm:$0xf0]  ;;  %v2797_v59 = vld [vmem:[#allocation8 + $0x2e0] sm:$0xf]  ;;  %v2623_v54 = vld [vmem:[#allocation8 + $0x190] sm:$0xf0] }
  0x57   :  { %605 = vmatpush.bf16.msrb.mxu0 %v2198_v4  ;;  %v3225_v60 = vld [vmem:[#allocation8 + $0x2ec] sm:$0xf0]  ;;  %v2557_v1 = vld [vmem:[#allocation8 + $0x100] sm:$0xf] }
  0x58   :  { %624 = vmatpush.bf16.msrb.mxu1 %v2326_v62  ;;  %v2798_v62 = vor.u32 %v3225_v60, %v2797_v59  ;;  %v3165_v2 = vld [vmem:[#allocation8 + $0x10c] sm:$0xf0]  ;;  %v2781_v4 = vld [vmem:[#allocation8 + $0x2c0] sm:$0xf]  ;;  %v3139_v60 = vld [vmem:[#allocation8 + $0x44] sm:$0xf] }
  0x59   :  { %643 = vmatpush.bf16.msrb.mxu2 %v2202_v58  ;;  %v2574_v58 = vor.u32 %v3169_v57, %v2573_v56  ;;  %v2558_v3 = vor.u32 %v3165_v2, %v2557_v1  ;;  %v3221_v5 = vld [vmem:[#allocation8 + $0x2cc] sm:$0xf0]  ;;  %v2925_v10 = vld [vmem:[#allocation8 + $0x3e0] sm:$0xf]  ;;  %v2466_v63 = vor.u32 %v3139_v60, %v2463_v61  ;;  %v3175_v2 = vld [vmem:[#allocation8 + $0x164] sm:$0xf] }
  0x5a   :  { %662 = vmatpush.bf16.msrb.mxu3 %v2330_v7  ;;  %v2782_v7 = vor.u32 %v3221_v5, %v2781_v4  ;;  %v3257_v11 = vld [vmem:[#allocation8 + $0x3ec] sm:$0xf0]  ;;  %v2909_v22 = vld [vmem:[#allocation8 + $0x3c0] sm:$0xf] }
  0x5b   :  { %606 = vmatpush.bf16.msrb.mxu0 %v2182_v17  ;;  %v2926_v13 = vor.u32 %v3257_v11, %v2925_v10  ;;  %v3217_v17 = vld [vmem:[#allocation8 + $0x2ac] sm:$0xf0]  ;;  %v2749_v29 = vld [vmem:[#allocation8 + $0x280] sm:$0xf] }
  0x5c   :  { %625 = vmatpush.bf16.msrb.mxu1 %v2310_v12  ;;  %v3191_v12 = vld [vmem:[#allocation8 + $0x1e4] sm:$0xf]  ;;  %v3253_v23 = vld [vmem:[#allocation8 + $0x3cc] sm:$0xf0]  ;;  %v2877_v50 = vld [vmem:[#allocation8 + $0x380] sm:$0xf] }
  0x5d   :  { %644 = vmatpush.bf16.msrb.mxu2 %v2186_v8  ;;  %v2527_v8 = vld [vmem:[#allocation8 + $0xd0] sm:$0xf0]  ;;  %v2674_v15 = vor.u32 %v3191_v12, %v2671_v14  ;;  %v2910_v26 = vor.u32 %v3253_v23, %v2909_v22  ;;  %v3213_v30 = vld [vmem:[#allocation8 + $0x28c] sm:$0xf0]  ;;  %v2717_v57 = vld [vmem:[#allocation8 + $0x240] sm:$0xf] }
  0x5e   :  { %663 = vmatpush.bf16.msrb.mxu3 %v2314_v18  ;;  %607 = vmatmul.bf16.vlgmr.msrb.gmra.mxu0 %v3564_v44  ;;  %v2530_v9 = vor.u32 %v3155_v6, %v2527_v8  ;;  %v3151_v18 = vld [vmem:[#allocation8 + $0xa4] sm:$0xf]  ;;  %v3245_v51 = vld [vmem:[#allocation8 + $0x38c] sm:$0xf0]  ;;  %v2701_v12 = vld [vmem:[#allocation8 + $0x220] sm:$0xf] }
  0x5f   :  { %1477 = vmatpush.bf16.msra.mxu0 %v2542_v19  ;;  %626 = vmatmul.bf16.vlgmr.msrb.gmra.mxu1 %v3566_v49  ;;  %v2514_v21 = vor.u32 %v3151_v18, %v2511_v20  ;;  %v2878_v53 = vor.u32 %v3245_v51, %v2877_v50  ;;  %v3241_v1 = vld [vmem:[#allocation8 + $0x36c] sm:$0xf0]  ;;  %v3135_v14 = vld [vmem:[#allocation8 + $0x24] sm:$0xf]  ;;  %v2799_v50 = vld [vmem:[#allocation8 + $0x2f0] sm:$0xf0] }
  0x60   :  { %1496 = vmatpush.bf16.msra.mxu1 %v2670_v16  ;;  %645 = vmatmul.bf16.vlgmr.msrb.gmra.mxu2 %v3564_v44  ;;  %v3185_v44 = vld [vmem:[#allocation8 + $0x1ac] sm:$0xf0]  ;;  %v2765_v16 = vld [vmem:[#allocation8 + $0x2a0] sm:$0xf]  ;;  %v2549_v51 = vld [vmem:[#allocation8 + $0xe8] sm:$0xf] }
  0x61   :  { %664 = vmatmul.bf16.vlgmr.msrb.gmra.mxu3 %v3566_v49  ;;  %v2638_v33 = vor.u32 %v3185_v44, %v2637_v32  ;;  %v2477_v49 = vld [vmem:[#allocation8 + $0x60] sm:$0xf]  ;;  %1515 = vmatpush.bf16.msra.mxu2 %v2798_v62  ;;  %v2766_v19 = vor.u32 %v3217_v17, %v2765_v16  ;;  %v2750_v32 = vor.u32 %v3213_v30, %v2749_v29  ;;  %v2495_v44 = vld [vmem:[#allocation8 + $0x90] sm:$0xf0]  ;;  %v3237_v20 = vld [vmem:[#allocation8 + $0x34c] sm:$0xf0] }
  0x62   :  { %v2478_v36 = vor.u32 %v3145_v35, %v2477_v49  ;;  %1534 = vmatpush.bf16.msra.mxu3 %v2926_v13  ;;  %v2893_v49 = vld [vmem:[#allocation8 + $0x3a0] sm:$0xf]  ;;  %v3249_v35 = vld [vmem:[#allocation8 + $0x3ac] sm:$0xf0]  ;;  %v2447_v16 = vld [vmem:[#allocation8 + $0x30] sm:$0xf0] }
  0x63   :  { %1478 = vmatpush.bf16.msra.mxu0 %v2526_v24  ;;  %v3187_v24 = vld [vmem:[#allocation8 + $0x1c4] sm:$0xf]  ;;  %v3201_v13 = vld [vmem:[#allocation8 + $0x22c] sm:$0xf0]  ;;  %v2450_v18 = vor.u32 %v3135_v14, %v2447_v16  ;;  %v2685_v29 = vld [vmem:[#allocation8 + $0x200] sm:$0xf] }
  0x64   :  { %1497 = vmatpush.bf16.msra.mxu1 %v2654_v25  ;;  %v3588_v25 = vld [vmem:[#allocation7] sm:$0xf]  ;;  %v3197_v30 = vld [vmem:[#allocation8 + $0x20c] sm:$0xf0]  ;;  %v3194_v16 = vld [vmem:[#allocation8 + $0x1f4] sm:$0xf0] }
  0x65   :  { %1516 = vmatpush.bf16.msra.mxu2 %v2782_v7  ;;  %v3591_v37 = vperm.slane %v3588_v25, 0  ;;  %v2607_v7 = vld [vmem:[#allocation8 + $0x170] sm:$0xf0] }
  0x66   :  { %1535 = vmatpush.bf16.msra.mxu3 %v2910_v26  ;;  %v2610_v11 = vor.u32 %v3175_v2, %v2607_v7  ;;  %v2783_v2 = vld [vmem:[#allocation8 + $0x2d0] sm:$0xf0]  ;;  %v3158_v7 = vld [vmem:[#allocation8 + $0xd4] sm:$0xf0] }
  0x67   :  { %1479 = vmatpush.bf16.msra.mxu0 %v2510_v28  ;;  %v2658_v28 = vor.u32 %v3187_v24, %v2655_v27  ;;  %v2591_v24 = vld [vmem:[#allocation8 + $0x150] sm:$0xf0] }
  0x68   :  { %1498 = vmatpush.bf16.msra.mxu1 %v2638_v33 }
  0x69   :  { %1517 = vmatpush.bf16.msra.mxu2 %v2766_v19  ;;  %v2845_v19 = vld [vmem:[#allocation8 + $0x340] sm:$0xf] }
  0x6a   :  { %v2846_v23 = vor.u32 %v3237_v20, %v2845_v19 }
  0x6b   :  { %1480 = vmatpush.bf16.msra.mxu0 %v2494_v31  ;;  %v3147_v31 = vld [vmem:[#allocation8 + $0x84] sm:$0xf] }
  0x6c   :  { %1499 = vmatpush.bf16.msra.mxu1 %v2622_v40  ;;  %v2498_v33 = vor.u32 %v3147_v31, %v2495_v44  ;;  %v2894_v40 = vor.u32 %v3249_v35, %v2893_v49  ;;  %v2686_v31 = vor.u32 %v3197_v30, %v2685_v29  ;;  %v2431_v44 = vld [vmem:[#allocation8 + $0x10] sm:$0xf0]  ;;  %v3251_v29 = vld [vmem:[#allocation8 + $0x3c4] sm:$0xf] }
  0x6d   :  { %1518 = vmatpush.bf16.msra.mxu2 %v2750_v32  ;;  %v3131_v32 = vld [vmem:[#allocation8 + $0x4] sm:$0xf]  ;;  %v2911_v30 = vld [vmem:[#allocation8 + $0x3d0] sm:$0xf0] }
  0x6e   :  { %612 = vmatmul.bf16.gmra.mxu0 %v3572_v34  ;;  %1536 = vmatpush.bf16.msra.mxu3 %v2894_v40  ;;  %v2434_v35 = vor.u32 %v3131_v32, %v2431_v44  ;;  %v3167_v40 = vld [vmem:[#allocation8 + $0x124] sm:$0xf]  ;;  %v2914_v44 = vor.u32 %v3251_v29, %v2911_v30 }
  0x6f   :  { %631 = vmatmul.bf16.gmra.mxu1 %v3574_v39  ;;  %1481 = vmatpush.bf16.msra.mxu0 %v2478_v36  ;;  %v3183_v36 = vld [vmem:[#allocation8 + $0x1a4] sm:$0xf] }
  0x70   :  { %650 = vmatmul.bf16.gmra.mxu2 %v3572_v34  ;;  %v2606_v34 = vor.u32 %v3177_v46, %v2605_v45  ;;  %v2733_v45 = vld [vmem:[#allocation8 + $0x260] sm:$0xf]  ;;  %v3209_v46 = vld [vmem:[#allocation8 + $0x26c] sm:$0xf0] }
  0x71   :  { %669 = vmatmul.bf16.gmra.mxu3 %v3574_v39  ;;  %v2445_v39 = vld [vmem:[#allocation8 + $0x20] sm:$0xf] }
  0x72   :  { %1500 = vmatpush.bf16.msra.mxu1 %v2606_v34  ;;  %v2446_v48 = vor.u32 %v3137_v47, %v2445_v39  ;;  %v3143_v34 = vld [vmem:[#allocation8 + $0x64] sm:$0xf]  ;;  %v2734_v39 = vor.u32 %v3209_v46, %v2733_v45  ;;  %v2479_v47 = vld [vmem:[#allocation8 + $0x70] sm:$0xf0]  ;;  %1537 = vmatpush.bf16.msra.mxu3 %v2878_v53 }
  0x73   :  { %1482 = vmatpush.bf16.msra.mxu0 %v2462_v43  ;;  %v2642_v43 = vor.u32 %v3183_v36, %v2639_v41  ;;  %v2829_v36 = vld [vmem:[#allocation8 + $0x320] sm:$0xf] }
  0x74   :  { %1519 = vmatpush.bf16.msra.mxu2 %v2734_v39 }
  0x76   :  { %1501 = vmatpush.bf16.msra.mxu1 %v2590_v52  ;;  %v3179_v52 = vld [vmem:[#allocation8 + $0x184] sm:$0xf] }
  0x77   :  { %1483 = vmatpush.bf16.msra.mxu0 %v2446_v48  ;;  %v2482_v48 = vor.u32 %v3143_v34, %v2479_v47  ;;  %v2626_v56 = vor.u32 %v3179_v52, %v2623_v54  ;;  %v2575_v34 = vld [vmem:[#allocation8 + $0x130] sm:$0xf0]  ;;  %v3162_v54 = vld [vmem:[#allocation8 + $0xf4] sm:$0xf0] }
  0x78   :  { %v2578_v47 = vor.u32 %v3167_v40, %v2575_v34  ;;  %v2751_v40 = vld [vmem:[#allocation8 + $0x290] sm:$0xf0] }
  0x7a   :  { %1502 = vmatpush.bf16.msra.mxu1 %v2574_v58  ;;  %v3205_v58 = vld [vmem:[#allocation8 + $0x24c] sm:$0xf0] }
  0x7b   :  { %1484 = vmatpush.bf16.msra.mxu0 %v2430_v55  ;;  %v2718_v59 = vor.u32 %v3205_v58, %v2717_v57  ;;  %v3229_v57 = vld [vmem:[#allocation8 + $0x30c] sm:$0xf0]  ;;  %v3163_v58 = vld [vmem:[#allocation8 + $0x104] sm:$0xf] }
  0x7d   :  { %1520 = vmatpush.bf16.msra.mxu2 %v2718_v59 }
  0x7e   :  { %1503 = vmatpush.bf16.msra.mxu1 %v2558_v3  ;;  %v3595_v3 = vperm.slane %v3588_v25, 1 }
  0x7f   :  { %1553 = vmatpush.bf16.msrb.mxu0 %v2546_v0  ;;  %v2861_v0 = vld [vmem:[#allocation8 + $0x360] sm:$0xf] }
  0x80   :  { %v2862_v6 = vor.u32 %v3241_v1, %v2861_v0  ;;  %v3219_v1 = vld [vmem:[#allocation8 + $0x2c4] sm:$0xf] }
  0x82   :  { %1572 = vmatpush.bf16.msrb.mxu1 %v2674_v15  ;;  %1538 = vmatpush.bf16.msra.mxu3 %v2862_v6  ;;  %v2702_v15 = vor.u32 %v3201_v13, %v2701_v12  ;;  %v2533_v6 = vld [vmem:[#allocation8 + $0xc8] sm:$0xf] }
  0x83   :  { %1554 = vmatpush.bf16.msrb.mxu0 %v2530_v9  ;;  %v2677_v12 = vld [vmem:[#allocation8 + $0x1e8] sm:$0xf] }
  0x84   :  { %1521 = vmatpush.bf16.msra.mxu2 %v2702_v15  ;;  %v2678_v20 = vor.u32 %v3194_v16, %v2677_v12  ;;  %v2719_v12 = vld [vmem:[#allocation8 + $0x250] sm:$0xf0] }
  0x86   :  { %1573 = vmatpush.bf16.msrb.mxu1 %v2658_v28  ;;  %1539 = vmatpush.bf16.msra.mxu3 %v2846_v23  ;;  %v2517_v23 = vld [vmem:[#allocation8 + $0xa8] sm:$0xf] }
  0x87   :  { %1555 = vmatpush.bf16.msrb.mxu0 %v2514_v21  ;;  %v3171_v21 = vld [vmem:[#allocation8 + $0x144] sm:$0xf] }
  0x88   :  { %v2594_v28 = vor.u32 %v3171_v21, %v2591_v24  ;;  %1522 = vmatpush.bf16.msra.mxu2 %v2686_v31  ;;  %v3215_v21 = vld [vmem:[#allocation8 + $0x2a4] sm:$0xf]  ;;  %v2661_v31 = vld [vmem:[#allocation8 + $0x1c8] sm:$0xf] }
  0x8a   :  { %1574 = vmatpush.bf16.msrb.mxu1 %v2642_v43 }
  0x8b   :  { %1556 = vmatpush.bf16.msrb.mxu0 %v2498_v33 }
  0x8e   :  { %1575 = vmatpush.bf16.msrb.mxu1 %v2626_v56  ;;  %v2813_v56 = vld [vmem:[#allocation8 + $0x300] sm:$0xf] }
  0x8f   :  { %1557 = vmatpush.bf16.msrb.mxu0 %v2482_v48  ;;  %v3223_v48 = vld [vmem:[#allocation8 + $0x2e4] sm:$0xf]  ;;  %v2814_v61 = vor.u32 %v3229_v57, %v2813_v56 }
  0x90   :  { %v2802_v53 = vor.u32 %v3223_v48, %v2799_v50  ;;  %v2645_v48 = vld [vmem:[#allocation8 + $0x1a8] sm:$0xf] }
  0x92   :  { %1576 = vmatpush.bf16.msrb.mxu1 %v2610_v11  ;;  %1591 = vmatpush.bf16.msrb.mxu2 %v2802_v53  ;;  %v2927_v11 = vld [vmem:[#allocation8 + $0x3f0] sm:$0xf0] }
  0x93   :  { %1558 = vmatpush.bf16.msrb.mxu0 %v2466_v63 }
  0x96   :  { %1577 = vmatpush.bf16.msrb.mxu1 %v2594_v28 }
  0x97   :  { %1559 = vmatpush.bf16.msrb.mxu0 %v2450_v18 }
  0x9a   :  { %1578 = vmatpush.bf16.msrb.mxu1 %v2578_v47  ;;  %v2895_v47 = vld [vmem:[#allocation8 + $0x3b0] sm:$0xf0] }
  0x9b   :  { %1560 = vmatpush.bf16.msrb.mxu0 %v2434_v35 }
  0xbb   :  { %v532_v38 = vpop.f32.mrf.mxu0 }
  0xbc   :  { %v551_v42 = vpop.f32.mrf.mxu1  ;;  %v533_v55 = vadd.f32 %v532_v38, %v3591_v37  ;;  %v3233_v38 = vld [vmem:[#allocation8 + $0x32c] sm:$0xf0] }
  0xbd   :  { %v2830_v46 = vor.u32 %v3233_v38, %v2829_v36  ;;  %v3211_v38 = vld [vmem:[#allocation8 + $0x284] sm:$0xf] }
  0xbe   :  { %v552_v8 = vadd.f32 %v551_v42, %v533_v55  ;;  %v2550_v55 = vor.u32 %v3162_v54, %v2549_v51  ;;  %v3186_v54 = vld [vmem:[#allocation8 + $0x1b4] sm:$0xf0] }
  0xbf   :  { %1540 = vmatpush.bf16.msra.mxu3 %v2830_v46  ;;  %v2646_v57 = vor.u32 %v3186_v54, %v2645_v48  ;;  %v2437_v48 = vld [vmem:[#allocation8 + $0x8] sm:$0xf]  ;;  %v2831_v54 = vld [vmem:[#allocation8 + $0x330] sm:$0xf0] }
  0xc0   :  { %v675_v26 = vmax.f32 %v552_v8, 0.0 }
  0xc3   :  { %v570_v62 = vpop.f32.mrf.mxu2  ;;  %v534_v5 = vpop.f32.mrf.mxu0  ;;  %1541 = vmatpush.bf16.msra.mxu3 %v2814_v61 }
  0xc4   :  { %v589_v4 = vpop.f32.mrf.mxu3  ;;  %v535_v9 = vadd.f32 %v534_v5, %v3591_v37  ;;  %v553_v10 = vpop.f32.mrf.mxu1  ;;  %v571_v22 = vadd.f32 %v570_v62, %v3595_v3  ;;  %v2559_v62 = vld [vmem:[#allocation8 + $0x110] sm:$0xf0]  ;;  %v2786_v5 = vor.u32 %v3219_v1, %v2783_v2  ;;  %v3243_v1 = vld [vmem:[#allocation8 + $0x384] sm:$0xf] }
  0xc5   :  { %v2562_v0 = vor.u32 %v3163_v58, %v2559_v62  ;;  %v3207_v58 = vld [vmem:[#allocation8 + $0x264] sm:$0xf]  ;;  %v3614_v62 = vperm.slane %v3588_v25, 2  ;;  %v2879_v2 = vld [vmem:[#allocation8 + $0x390] sm:$0xf0] }
  0xc6   :  { %v554_v17 = vadd.f32 %v553_v10, %v535_v9  ;;  %v590_v41 = vadd.f32 %v589_v4, %v571_v22  ;;  %v2534_v9 = vor.u32 %v3158_v7, %v2533_v6  ;;  %v3255_v10 = vld [vmem:[#allocation8 + $0x3e4] sm:$0xf]  ;;  %1592 = vmatpush.bf16.msrb.mxu2 %v2786_v5  ;;  %v2767_v22 = vld [vmem:[#allocation8 + $0x2b0] sm:$0xf0]  ;;  %v2629_v5 = vld [vmem:[#allocation8 + $0x188] sm:$0xf] }
  0xc7   :  { %1579 = vmatpush.bf16.msrb.mxu1 %v2562_v0  ;;  %v2930_v15 = vor.u32 %v3255_v10, %v2927_v11  ;;  %v2770_v24 = vor.u32 %v3215_v21, %v2767_v22  ;;  %v3203_v11 = vld [vmem:[#allocation8 + $0x244] sm:$0xf]  ;;  %v2613_v21 = vld [vmem:[#allocation8 + $0x168] sm:$0xf]  ;;  %v3620_v22 = vperm.slane %v3588_v25, 3 }
  0xc8   :  { %v679_v27 = vmax.f32 %v554_v17, 0.0  ;;  %v676_v59 = vmax.f32 %v590_v41, 0.0  ;;  %v2754_v41 = vor.u32 %v3211_v38, %v2751_v40  ;;  %v2722_v16 = vor.u32 %v3203_v11, %v2719_v12  ;;  %v2847_v38 = vld [vmem:[#allocation8 + $0x350] sm:$0xf0]  ;;  %v2551_v11 = vld [vmem:[#allocation8 + $0xf8] sm:$0xf0] }
  0xc9   :  { %1610 = vmatpush.bf16.msrb.mxu3 %v2930_v15  ;;  %v3227_v12 = vld [vmem:[#allocation8 + $0x304] sm:$0xf] }
  0xca   :  { %v3599_v33 = vpack.c.bf16 %v679_v27, %v675_v26  ;;  %v3154_v26 = vld [vmem:[#allocation8 + $0xb4] sm:$0xf0]  ;;  %1593 = vmatpush.bf16.msrb.mxu2 %v2770_v24 }
  0xcb   :  { %v572_v49 = vpop.f32.mrf.mxu2  ;;  %v537_v45 = vpop.f32.mrf.mxu0  ;;  %v2518_v28 = vor.u32 %v3154_v26, %v2517_v23 }
  0xcc   :  { %v573_v42 = vadd.f32 %v572_v49, %v3595_v3  ;;  %v591_v43 = vpop.f32.mrf.mxu3  ;;  %v556_v39 = vpop.f32.mrf.mxu1  ;;  %1485 = vmatmul.bf16.vlgmr.msra.gmra.mxu0 %v3599_v33  ;;  %v538_v63 = vadd.f32 %v537_v45, %v3591_v37 }
  0xcd   :  { %1629 = vmatpush.bf16.msra.mxu0 %v2550_v55  ;;  %1611 = vmatpush.bf16.msrb.mxu3 %v2914_v44  ;;  %v2453_v44 = vld [vmem:[#allocation8 + $0x28] sm:$0xf] }
  0xce   :  { %v592_v52 = vadd.f32 %v591_v43, %v573_v42  ;;  %v557_v17 = vadd.f32 %v556_v39, %v538_v63  ;;  %v2501_v42 = vld [vmem:[#allocation8 + $0x88] sm:$0xf]  ;;  %v3150_v43 = vld [vmem:[#allocation8 + $0x94] sm:$0xf0]  ;;  %v3247_v39 = vld [vmem:[#allocation8 + $0x3a4] sm:$0xf]  ;;  %1594 = vmatpush.bf16.msrb.mxu2 %v2754_v41 }
  0xcf   :  { %v2502_v34 = vor.u32 %v3150_v43, %v2501_v42  ;;  %v2898_v53 = vor.u32 %v3247_v39, %v2895_v47  ;;  %v2597_v42 = vld [vmem:[#allocation8 + $0x148] sm:$0xf]  ;;  %v3174_v43 = vld [vmem:[#allocation8 + $0x154] sm:$0xf0]  ;;  %v2687_v47 = vld [vmem:[#allocation8 + $0x210] sm:$0xf0] }
  0xd0   :  { %v680_v60 = vmax.f32 %v592_v52, 0.0  ;;  %v683_v49 = vmax.f32 %v557_v17, 0.0  ;;  %v3142_v17 = vld [vmem:[#allocation8 + $0x54] sm:$0xf0]  ;;  %v2598_v39 = vor.u32 %v3174_v43, %v2597_v42  ;;  %v2773_v42 = vld [vmem:[#allocation8 + $0x2a8] sm:$0xf] }
  0xd1   :  { %1630 = vmatpush.bf16.msra.mxu0 %v2534_v9  ;;  %1612 = vmatpush.bf16.msrb.mxu3 %v2898_v53  ;;  %v3182_v9 = vld [vmem:[#allocation8 + $0x194] sm:$0xf0]  ;;  %v3231_v53 = vld [vmem:[#allocation8 + $0x324] sm:$0xf] }
  0xd2   :  { %v3604_v4 = vpack.c.bf16 %v680_v60, %v676_v59  ;;  %v2735_v59 = vld [vmem:[#allocation8 + $0x270] sm:$0xf0]  ;;  %v2485_v60 = vld [vmem:[#allocation8 + $0x68] sm:$0xf]  ;;  %v2630_v10 = vor.u32 %v3182_v9, %v2629_v5  ;;  %v3160_v9 = vld [vmem:[#allocation8 + $0xec] sm:$0xf] }
  0xd3   :  { %v575_v8 = vpop.f32.mrf.mxu2  ;;  %v539_v14 = vpop.f32.mrf.mxu0  ;;  %v2738_v63 = vor.u32 %v3207_v58, %v2735_v59  ;;  %v2581_v58 = vld [vmem:[#allocation8 + $0x128] sm:$0xf]  ;;  %v3170_v59 = vld [vmem:[#allocation8 + $0x134] sm:$0xf0] }
  0xd4   :  { %v594_v13 = vpop.f32.mrf.mxu3  ;;  %1504 = vmatmul.bf16.vlgmr.msra.gmra.mxu1 %v3604_v4  ;;  %v540_v18 = vadd.f32 %v539_v14, %v3591_v37  ;;  %v558_v19 = vpop.f32.mrf.mxu1  ;;  %v576_v32 = vadd.f32 %v575_v8, %v3595_v3  ;;  %v3190_v37 = vld [vmem:[#allocation8 + $0x1d4] sm:$0xf0]  ;;  %v2882_v8 = vor.u32 %v3243_v1, %v2879_v2 }
  0xd5   :  { %1648 = vmatpush.bf16.msra.mxu1 %v2678_v20  ;;  %1631 = vmatpush.bf16.msra.mxu0 %v2518_v28  ;;  %v2662_v36 = vor.u32 %v3190_v37, %v2661_v31  ;;  %v2863_v20 = vld [vmem:[#allocation8 + $0x370] sm:$0xf0]  ;;  %v3199_v31 = vld [vmem:[#allocation8 + $0x224] sm:$0xf]  ;;  %v3218_v43 = vld [vmem:[#allocation8 + $0x2b4] sm:$0xf0] }
  0xd6   :  { %v559_v27 = vadd.f32 %v558_v19, %v540_v18  ;;  %v595_v50 = vadd.f32 %v594_v13, %v576_v32  ;;  %1595 = vmatpush.bf16.msrb.mxu2 %v2738_v63  ;;  %v2469_v13 = vld [vmem:[#allocation8 + $0x48] sm:$0xf]  ;;  %1613 = vmatpush.bf16.msrb.mxu3 %v2882_v8  ;;  %v3239_v19 = vld [vmem:[#allocation8 + $0x364] sm:$0xf]  ;;  %v2703_v32 = vld [vmem:[#allocation8 + $0x230] sm:$0xf0] }
  0xd7   :  { %v2470_v18 = vor.u32 %v3142_v17, %v2469_v13  ;;  %v2866_v26 = vor.u32 %v3239_v19, %v2863_v20  ;;  %v2706_v25 = vor.u32 %v3199_v31, %v2703_v32  ;;  %v3226_v8 = vld [vmem:[#allocation8 + $0x2f4] sm:$0xf0]  ;;  %v2815_v13 = vld [vmem:[#allocation8 + $0x310] sm:$0xf0]  ;;  %v2789_v20 = vld [vmem:[#allocation8 + $0x2c8] sm:$0xf] }
  0xd8   :  { %v687_v35 = vmax.f32 %v559_v27, 0.0  ;;  %v684_v6 = vmax.f32 %v595_v50, 0.0  ;;  %v3178_v27 = vld [vmem:[#allocation8 + $0x174] sm:$0xf0]  ;;  %v2818_v17 = vor.u32 %v3227_v12, %v2815_v13 }
  0xd9   :  { %1649 = vmatpush.bf16.msra.mxu1 %v2662_v36  ;;  %1632 = vmatpush.bf16.msra.mxu0 %v2502_v34  ;;  %v2614_v30 = vor.u32 %v3178_v27, %v2613_v21  ;;  %v3235_v36 = vld [vmem:[#allocation8 + $0x344] sm:$0xf]  ;;  %v3134_v50 = vld [vmem:[#allocation8 + $0x14] sm:$0xf0] }
  0xda   :  { %v3609_v45 = vpack.c.bf16 %v687_v35, %v683_v49  ;;  %1596 = vmatpush.bf16.msrb.mxu2 %v2722_v16  ;;  %1614 = vmatpush.bf16.msrb.mxu3 %v2866_v26  ;;  %v3138_v35 = vld [vmem:[#allocation8 + $0x34] sm:$0xf0]  ;;  %v2850_v41 = vor.u32 %v3235_v36, %v2847_v38  ;;  %v2554_v16 = vor.u32 %v3160_v9, %v2551_v11  ;;  %v2535_v26 = vld [vmem:[#allocation8 + $0xd8] sm:$0xf0] }
  0xdb   :  { %v577_v46 = vpop.f32.mrf.mxu2  ;;  %v608_v55 = vpop.f32.mrf.mxu0  ;;  %v2454_v40 = vor.u32 %v3138_v35, %v2453_v44  ;;  %v3166_v19 = vld [vmem:[#allocation8 + $0x114] sm:$0xf0]  ;;  %v2933_v44 = vld [vmem:[#allocation8 + $0x3e8] sm:$0xf]  ;;  %v2679_v38 = vld [vmem:[#allocation8 + $0x1f8] sm:$0xf0] }
  0xdc   :  { %v578_v51 = vadd.f32 %v577_v46, %v3595_v3  ;;  %v596_v52 = vpop.f32.mrf.mxu3  ;;  %v627_v56 = vpop.f32.mrf.mxu1  ;;  %1490 = vmatmul.bf16.gmra.mxu0 %v3609_v45  ;;  %v3146_v3 = vld [vmem:[#allocation8 + $0x74] sm:$0xf0]  ;;  %v609_v15 = vadd.f32 %v608_v55, %v3614_v62  ;;  %v3195_v46 = vld [vmem:[#allocation8 + $0x204] sm:$0xf]  ;;  %v2647_v9 = vld [vmem:[#allocation8 + $0x1b8] sm:$0xf0] }
  0xdd   :  { %1650 = vmatpush.bf16.msra.mxu1 %v2646_v57  ;;  %v2486_v0 = vor.u32 %v3146_v3, %v2485_v60  ;;  %v2438_v57 = vor.u32 %v3134_v50, %v2437_v48  ;;  %v2834_v60 = vor.u32 %v3231_v53, %v2831_v54  ;;  %v2519_v48 = vld [vmem:[#allocation8 + $0xb8] sm:$0xf0]  ;;  %v2917_v50 = vld [vmem:[#allocation8 + $0x3c8] sm:$0xf] }
  0xde   :  { %v597_v61 = vadd.f32 %v596_v52, %v578_v51  ;;  %v628_v37 = vadd.f32 %v627_v56, %v609_v15  ;;  %1597 = vmatpush.bf16.msrb.mxu2 %v2706_v25  ;;  %v2690_v52 = vor.u32 %v3195_v46, %v2687_v47  ;;  %1615 = vmatpush.bf16.msrb.mxu3 %v2850_v41  ;;  %v3152_v46 = vld [vmem:[#allocation8 + $0xac] sm:$0xf] }
  0xdf   :  { %1633 = vmatpush.bf16.msra.mxu0 %v2486_v0  ;;  %v2774_v47 = vor.u32 %v3218_v43, %v2773_v42  ;;  %v2522_v53 = vor.u32 %v3152_v46, %v2519_v48  ;;  %v2869_v42 = vld [vmem:[#allocation8 + $0x368] sm:$0xf]  ;;  %v3242_v43 = vld [vmem:[#allocation8 + $0x374] sm:$0xf0]  ;;  %v3176_v46 = vld [vmem:[#allocation8 + $0x16c] sm:$0xf] }
  0xe0   :  { %v688_v7 = vmax.f32 %v597_v61, 0.0  ;;  %v677_v55 = vmax.f32 %v628_v37, 0.0  ;;  %v2582_v61 = vor.u32 %v3170_v59, %v2581_v58  ;;  %v3258_v37 = vld [vmem:[#allocation8 + $0x3f4] sm:$0xf0]  ;;  %v2709_v48 = vld [vmem:[#allocation8 + $0x228] sm:$0xf] }
  0xe1   :  { %1651 = vmatpush.bf16.msra.mxu1 %v2630_v10  ;;  %v2934_v36 = vor.u32 %v3258_v37, %v2933_v44  ;;  %v3206_v37 = vld [vmem:[#allocation8 + $0x254] sm:$0xf0] }
  0xe2   :  { %v3616_v14 = vpack.c.bf16 %v688_v7, %v684_v6  ;;  %1598 = vmatpush.bf16.msrb.mxu2 %v2690_v52  ;;  %v2805_v7 = vld [vmem:[#allocation8 + $0x2e8] sm:$0xf]  ;;  %1616 = vmatpush.bf16.msrb.mxu3 %v2834_v60  ;;  %v3214_v60 = vld [vmem:[#allocation8 + $0x294] sm:$0xf0] }
  0xe3   :  { %v646_v23 = vpop.f32.mrf.mxu2  ;;  %v610_v28 = vpop.f32.mrf.mxu0  ;;  %1634 = vmatpush.bf16.msra.mxu0 %v2470_v18  ;;  %v2806_v10 = vor.u32 %v3226_v8, %v2805_v7  ;;  %v2565_v18 = vld [vmem:[#allocation8 + $0x108] sm:$0xf]  ;;  %v3184_v8 = vld [vmem:[#allocation8 + $0x1ac] sm:$0xf] }
  0xe4   :  { %v665_v24 = vpop.f32.mrf.mxu3  ;;  %1509 = vmatmul.bf16.gmra.mxu1 %v3616_v14  ;;  %v629_v29 = vpop.f32.mrf.mxu1  ;;  %v611_v49 = vadd.f32 %v610_v28, %v3614_v62  ;;  %v647_v51 = vadd.f32 %v646_v23, %v3620_v22  ;;  %v2566_v21 = vor.u32 %v3166_v19, %v2565_v18  ;;  %v3222_v23 = vld [vmem:[#allocation8 + $0x2d4] sm:$0xf0]  ;;  %v2650_v11 = vor.u32 %v3184_v8, %v2647_v9  ;;  %v3144_v19 = vld [vmem:[#allocation8 + $0x6c] sm:$0xf]  ;;  %v2583_v8 = vld [vmem:[#allocation8 + $0x138] sm:$0xf0] }
  0xe5   :  { %1652 = vmatpush.bf16.msra.mxu1 %v2614_v30  ;;  %v3210_v18 = vld [vmem:[#allocation8 + $0x274] sm:$0xf0] }
  0xe6   :  { %v630_v34 = vadd.f32 %v629_v29, %v611_v49  ;;  %v666_v1 = vadd.f32 %v665_v24, %v647_v51  ;;  %v3156_v24 = vld [vmem:[#allocation8 + $0xcc] sm:$0xf]  ;;  %v2790_v29 = vor.u32 %v3222_v23, %v2789_v20  ;;  %1617 = vmatpush.bf16.msrb.mxu3 %v2818_v17  ;;  %v3254_v51 = vld [vmem:[#allocation8 + $0x3d4] sm:$0xf0]  ;;  %v2741_v17 = vld [vmem:[#allocation8 + $0x268] sm:$0xf] }
  0xe7   :  { %1635 = vmatpush.bf16.msra.mxu0 %v2454_v40  ;;  %v2538_v30 = vor.u32 %v3156_v24, %v2535_v26  ;;  %v3192_v49 = vld [vmem:[#allocation8 + $0x1ec] sm:$0xf]  ;;  %v2918_v54 = vor.u32 %v3254_v51, %v2917_v50  ;;  %v2487_v23 = vld [vmem:[#allocation8 + $0x78] sm:$0xf0]  ;;  %v2885_v24 = vld [vmem:[#allocation8 + $0x388] sm:$0xf] }
  0xe8   :  { %v681_v56 = vmax.f32 %v630_v34, 0.0  ;;  %v678_v27 = vmax.f32 %v666_v1, 0.0  ;;  %v2682_v41 = vor.u32 %v3192_v49, %v2679_v38  ;;  %v2901_v1 = vld [vmem:[#allocation8 + $0x3a8] sm:$0xf]  ;;  %v3246_v26 = vld [vmem:[#allocation8 + $0x394] sm:$0xf0] }
  0xe9   :  { %1653 = vmatpush.bf16.msra.mxu1 %v2598_v39  ;;  %v3140_v49 = vld [vmem:[#allocation8 + $0x4c] sm:$0xf]  ;;  %v3202_v50 = vld [vmem:[#allocation8 + $0x234] sm:$0xf0] }
  0xea   :  { %v3625_v63 = vpack.c.bf16 %v681_v56, %v677_v55  ;;  %v3188_v55 = vld [vmem:[#allocation8 + $0x1cc] sm:$0xf]  ;;  %v2663_v56 = vld [vmem:[#allocation8 + $0x1d8] sm:$0xf0] }
  0xeb   :  { %v648_v3 = vpop.f32.mrf.mxu2  ;;  %v613_v5 = vpop.f32.mrf.mxu0  ;;  %1636 = vmatpush.bf16.msra.mxu0 %v2438_v57  ;;  %v2757_v57 = vld [vmem:[#allocation8 + $0x288] sm:$0xf]  ;;  %v2666_v59 = vor.u32 %v3188_v55, %v2663_v56  ;;  %v3136_v51 = vld [vmem:[#allocation8 + $0x2c] sm:$0xf]  ;;  %v3238_v55 = vld [vmem:[#allocation8 + $0x354] sm:$0xf0] }
  0xec   :  { %v667_v0 = vpop.f32.mrf.mxu3  ;;  %v649_v2 = vadd.f32 %v648_v3, %v3620_v22  ;;  %v632_v6 = vpop.f32.mrf.mxu1  ;;  %1561 = vmatmul.bf16.vlgmr.msrb.gmra.mxu0 %v3599_v33  ;;  %1523 = vmatmul.bf16.vlgmr.msra.gmra.mxu2 %v3625_v63  ;;  %v614_v31 = vadd.f32 %v613_v5, %v3614_v62  ;;  %v2503_v3 = vld [vmem:[#allocation8 + $0x98] sm:$0xf0] }
  0xed   :  { %1654 = vmatpush.bf16.msra.mxu1 %v2582_v61  ;;  %1667 = vmatpush.bf16.msra.mxu2 %v2806_v10  ;;  %v3148_v61 = vld [vmem:[#allocation8 + $0x8c] sm:$0xf] }
  0xee   :  { %v668_v15 = vadd.f32 %v667_v0, %v649_v2  ;;  %v633_v34 = vadd.f32 %v632_v6, %v614_v31  ;;  %v2758_v0 = vor.u32 %v3214_v60, %v2757_v57  ;;  %v3250_v2 = vld [vmem:[#allocation8 + $0x3b4] sm:$0xf0]  ;;  %v2506_v7 = vor.u32 %v3148_v61, %v2503_v3  ;;  %v2725_v31 = vld [vmem:[#allocation8 + $0x248] sm:$0xf] }
  0xef   :  { %1705 = vmatpush.bf16.msrb.mxu0 %v2554_v16  ;;  %v2902_v10 = vor.u32 %v3250_v2, %v2901_v1  ;;  %v2726_v38 = vor.u32 %v3206_v37, %v2725_v31  ;;  %v2693_v60 = vld [vmem:[#allocation8 + $0x208] sm:$0xf]  ;;  %v3198_v3 = vld [vmem:[#allocation8 + $0x214] sm:$0xf0]  ;;  %v3252_v31 = vld [vmem:[#allocation8 + $0x3cc] sm:$0xf] }
  0xf0   :  { %v682_v28 = vmax.f32 %v668_v15, 0.0  ;;  %v685_v5 = vmax.f32 %v633_v34, 0.0  ;;  %v2870_v34 = vor.u32 %v3242_v43, %v2869_v42  ;;  %v2694_v1 = vor.u32 %v3198_v3, %v2693_v60  ;;  %v2837_v2 = vld [vmem:[#allocation8 + $0x328] sm:$0xf]  ;;  %v2919_v37 = vld [vmem:[#allocation8 + $0x3d8] sm:$0xf0] }
  0xf1   :  { %1655 = vmatpush.bf16.msra.mxu1 %v2566_v21  ;;  %1668 = vmatpush.bf16.msra.mxu2 %v2790_v29  ;;  %v2742_v21 = vor.u32 %v3210_v18, %v2741_v17  ;;  %v2886_v29 = vor.u32 %v3246_v26, %v2885_v24  ;;  %v3230_v17 = vld [vmem:[#allocation8 + $0x314] sm:$0xf0]  ;;  %v3164_v18 = vld [vmem:[#allocation8 + $0x10c] sm:$0xf]  ;;  %v2855_v60 = vld [vmem:[#allocation8 + $0x358] sm:$0xf0] }
  0xf2   :  { %v3631_v32 = vpack.c.bf16 %v682_v28, %v678_v27  ;;  %v2490_v28 = vor.u32 %v3144_v19, %v2487_v23  ;;  %v2791_v23 = vld [vmem:[#allocation8 + $0x2d8] sm:$0xf0]  ;;  %v3208_v43 = vld [vmem:[#allocation8 + $0x26c] sm:$0xf] }
  0xf3   :  { %v651_v25 = vpop.f32.mrf.mxu2  ;;  %v615_v40 = vpop.f32.mrf.mxu0  ;;  %1706 = vmatpush.bf16.msrb.mxu0 %v2538_v30  ;;  %v3180_v30 = vld [vmem:[#allocation8 + $0x18c] sm:$0xf] }
  0xf4   :  { %v670_v35 = vpop.f32.mrf.mxu3  ;;  %1580 = vmatmul.bf16.vlgmr.msrb.gmra.mxu1 %v3604_v4  ;;  %1542 = vmatmul.bf16.vlgmr.msra.gmra.mxu3 %v3631_v32  ;;  %v616_v39 = vadd.f32 %v615_v40, %v3614_v62  ;;  %v634_v52 = vpop.f32.mrf.mxu1  ;;  %v652_v62 = vadd.f32 %v651_v25, %v3620_v22  ;;  %v2471_v25 = vld [vmem:[#allocation8 + $0x58] sm:$0xf0]  ;;  %v3196_v3 = vld [vmem:[#allocation8 + $0x20c] sm:$0xf] }
  0xf5   :  { %1686 = vmatpush.bf16.msra.mxu3 %v2934_v36  ;;  %1724 = vmatpush.bf16.msrb.mxu1 %v2682_v41  ;;  %v2474_v40 = vor.u32 %v3140_v49, %v2471_v25  ;;  %v3212_v49 = vld [vmem:[#allocation8 + $0x28c] sm:$0xf]  ;;  %v2759_v25 = vld [vmem:[#allocation8 + $0x298] sm:$0xf0] }
  0xf6   :  { %v635_v58 = vadd.f32 %v634_v52, %v616_v39  ;;  %1669 = vmatpush.bf16.msra.mxu2 %v2774_v47  ;;  %v671_v15 = vadd.f32 %v670_v35, %v652_v62  ;;  %v2615_v39 = vld [vmem:[#allocation8 + $0x178] sm:$0xf0]  ;;  %v2710_v52 = vor.u32 %v3202_v50, %v2709_v48  ;;  %v3132_v62 = vld [vmem:[#allocation8 + $0xc] sm:$0xf] }
  0xf7   :  { %1707 = vmatpush.bf16.msrb.mxu0 %v2522_v53  ;;  %v2618_v47 = vor.u32 %v3176_v46, %v2615_v39  ;;  %v2455_v53 = vld [vmem:[#allocation8 + $0x38] sm:$0xf0]  ;;  %v3244_v39 = vld [vmem:[#allocation8 + $0x38c] sm:$0xf] }
  0xf8   :  { %v689_v6 = vmax.f32 %v635_v58, 0.0  ;;  %v686_v35 = vmax.f32 %v671_v15, 0.0  ;;  %v2458_v56 = vor.u32 %v3136_v51, %v2455_v53  ;;  %v3172_v58 = vld [vmem:[#allocation8 + $0x14c] sm:$0xf]  ;;  %v2743_v46 = vld [vmem:[#allocation8 + $0x278] sm:$0xf0] }
  0xf9   :  { %1687 = vmatpush.bf16.msra.mxu3 %v2918_v54  ;;  %1725 = vmatpush.bf16.msrb.mxu1 %v2666_v59  ;;  %v2853_v54 = vld [vmem:[#allocation8 + $0x348] sm:$0xf]  ;;  %v2599_v59 = vld [vmem:[#allocation8 + $0x158] sm:$0xf0]  ;;  %v3204_v48 = vld [vmem:[#allocation8 + $0x24c] sm:$0xf] }
  0xfa   :  { %v3637_v12 = vpack.c.bf16 %v689_v6, %v685_v5  ;;  %1670 = vmatpush.bf16.msra.mxu2 %v2758_v0  ;;  %v2854_v57 = vor.u32 %v3238_v55, %v2853_v54  ;;  %v2602_v61 = vor.u32 %v3172_v58, %v2599_v59  ;;  %v2439_v0 = vld [vmem:[#allocation8 + $0x18] sm:$0xf0]  ;;  %v3234_v5 = vld [vmem:[#allocation8 + $0x334] sm:$0xf0]  ;;  %v3168_v6 = vld [vmem:[#allocation8 + $0x12c] sm:$0xf] }
  0xfb   :  { %v653_v13 = vpop.f32.mrf.mxu2  ;;  %1708 = vmatpush.bf16.msrb.mxu0 %v2506_v7  ;;  %v2442_v7 = vor.u32 %v3132_v62, %v2439_v0  ;;  %v2838_v9 = vor.u32 %v3234_v5, %v2837_v2  ;;  %v2727_v51 = vld [vmem:[#allocation8 + $0x258] sm:$0xf0]  ;;  %v3240_v53 = vld [vmem:[#allocation8 + $0x36c] sm:$0xf] }
  0xfc   :  { %v654_v16 = vadd.f32 %v653_v13, %v3620_v22  ;;  %1566 = vmatmul.bf16.gmra.mxu0 %v3609_v45  ;;  %v672_v20 = vpop.f32.mrf.mxu3  ;;  %1528 = vmatmul.bf16.gmra.mxu2 %v3637_v12  ;;  %v2631_v22 = vld [vmem:[#allocation8 + $0x198] sm:$0xf0]  ;;  %v3236_v58 = vld [vmem:[#allocation8 + $0x34c] sm:$0xf] }
  0xfd   :  { %1688 = vmatpush.bf16.msra.mxu3 %v2902_v10  ;;  %1726 = vmatpush.bf16.msrb.mxu1 %v2650_v11  ;;  %v2634_v44 = vor.u32 %v3180_v30, %v2631_v22  ;;  %v2586_v10 = vor.u32 %v3168_v6, %v2583_v8  ;;  %v3224_v11 = vld [vmem:[#allocation8 + $0x2ec] sm:$0xf]  ;;  %v2807_v13 = vld [vmem:[#allocation8 + $0x2f8] sm:$0xf0] }
  0xfe   :  { %v673_v27 = vadd.f32 %v672_v20, %v654_v16  ;;  %1671 = vmatpush.bf16.msra.mxu2 %v2742_v21  ;;  %v2810_v15 = vor.u32 %v3224_v11, %v2807_v13  ;;  %v2821_v16 = vld [vmem:[#allocation8 + $0x308] sm:$0xf]  ;;  %v2567_v20 = vld [vmem:[#allocation8 + $0x118] sm:$0xf0]  ;;  %v3220_v21 = vld [vmem:[#allocation8 + $0x2cc] sm:$0xf] }
  0xff   :  { %1709 = vmatpush.bf16.msrb.mxu0 %v2490_v28  ;;  %v2822_v19 = vor.u32 %v3230_v17, %v2821_v16  ;;  %v2570_v24 = vor.u32 %v3164_v18, %v2567_v20  ;;  %v2794_v26 = vor.u32 %v3220_v21, %v2791_v23  ;;  %v2935_v28 = vld [vmem:[#allocation8 + $0x3f8] sm:$0xf0]  ;;  %v3216_v30 = vld [vmem:[#allocation8 + $0x2ac] sm:$0xf]  ;;  %v3259_v18 = vld [vmem:[#allocation11] sm:$0xff] }
 0x100   :  { %v690_v36 = vmax.f32 %v673_v27, 0.0  ;;  %v3256_v27 = vld [vmem:[#allocation8 + $0x3ec] sm:$0xf]  ;;  %v2775_v22 = vld [vmem:[#allocation8 + $0x2b8] sm:$0xf0]  ;;  %v3273_v21 = vld [vmem:[#allocation11 + $0x70] sm:$0xff] }
 0x101   :  { %1689 = vmatpush.bf16.msra.mxu3 %v2886_v29  ;;  %1727 = vmatpush.bf16.msrb.mxu1 %v2634_v44  ;;  %v2938_v29 = vor.u32 %v3256_v27, %v2935_v28  ;;  %v2778_v44 = vor.u32 %v3216_v30, %v2775_v22  ;;  %v2871_v54 = vld [vmem:[#allocation8 + $0x378] sm:$0xf0]  ;;  %v3228_v6 = vld [vmem:[#allocation8 + $0x30c] sm:$0xf] }
 0x102   :  { %v3642_v41 = vpack.c.bf16 %v690_v36, %v686_v35  ;;  %1672 = vmatpush.bf16.msra.mxu2 %v2726_v38  ;;  %v2922_v35 = vor.u32 %v3252_v31, %v2919_v37  ;;  %v3248_v36 = vld [vmem:[#allocation8 + $0x3ac] sm:$0xf]  ;;  %v2903_v38 = vld [vmem:[#allocation8 + $0x3b8] sm:$0xf0]  ;;  %v2874_v55 = vor.u32 %v3240_v53, %v2871_v54 }
 0x103   :  { %1710 = vmatpush.bf16.msrb.mxu0 %v2474_v40  ;;  %v2762_v40 = vor.u32 %v3212_v49, %v2759_v25  ;;  %v2906_v42 = vor.u32 %v3248_v36, %v2903_v38  ;;  %v2695_v62 = vld [vmem:[#allocation8 + $0x218] sm:$0xf0]  ;;  %v3260_v17 = vld [vmem:[#allocation11 + $0x8] sm:$0xff] }
 0x104   :  { %1585 = vmatmul.bf16.gmra.mxu1 %v3616_v14  ;;  %1547 = vmatmul.bf16.gmra.mxu3 %v3642_v41  ;;  %v2698_v0 = vor.u32 %v3196_v3, %v2695_v62  ;;  %v2839_v2 = vld [vmem:[#allocation8 + $0x338] sm:$0xf0]  ;;  %v3268_v38 = vld [vmem:[#allocation11 + $0x48] sm:$0xff] }
 0x105   :  { %1690 = vmatpush.bf16.msra.mxu3 %v2870_v34  ;;  %1728 = vmatpush.bf16.msrb.mxu1 %v2618_v47  ;;  %v2746_v34 = vor.u32 %v3208_v43, %v2743_v46  ;;  %v2887_v47 = vld [vmem:[#allocation8 + $0x398] sm:$0xf0]  ;;  %v3280_v62 = vld [vmem:[#allocation11 + $0xa8] sm:$0xff] }
 0x106   :  { %1673 = vmatpush.bf16.msra.mxu2 %v2710_v52  ;;  %v2890_v50 = vor.u32 %v3244_v39, %v2887_v47  ;;  %v2730_v52 = vor.u32 %v3204_v48, %v2727_v51  ;;  %v3267_v39 = vld [vmem:[#allocation11 + $0x40] sm:$0xff]  ;;  %v3282_v53 = vld [vmem:[#allocation11 + $0xb8] sm:$0xff] }
 0x107   :  { %1711 = vmatpush.bf16.msrb.mxu0 %v2458_v56  ;;  %v3200_v56 = vld [vmem:[#allocation8 + $0x22c] sm:$0xf] }
 0x109   :  { %1691 = vmatpush.bf16.msra.mxu3 %v2854_v57  ;;  %1729 = vmatpush.bf16.msrb.mxu1 %v2602_v61  ;;  %v2711_v57 = vld [vmem:[#allocation8 + $0x238] sm:$0xf0]  ;;  %v2858_v61 = vor.u32 %v3236_v58, %v2855_v60 }
 0x10a   :  { %1674 = vmatpush.bf16.msra.mxu2 %v2694_v1  ;;  %v2714_v59 = vor.u32 %v3200_v56, %v2711_v57  ;;  %v3232_v1 = vld [vmem:[#allocation8 + $0x32c] sm:$0xf]  ;;  %v3281_v57 = vld [vmem:[#allocation11 + $0xb0] sm:$0xff] }
 0x10b   :  { %1712 = vmatpush.bf16.msrb.mxu0 %v2442_v7  ;;  %v2842_v5 = vor.u32 %v3232_v1, %v2839_v2  ;;  %v2823_v7 = vld [vmem:[#allocation8 + $0x318] sm:$0xf0] }
 0x10c   :  { %1637 = vmatmul.bf16.vlgmr.msra.gmra.mxu0 %v3599_v33  ;;  %1599 = vmatmul.bf16.vlgmr.msrb.gmra.mxu2 %v3625_v63  ;;  %v2826_v8 = vor.u32 %v3228_v6, %v2823_v7 }
 0x10d   :  { %1692 = vmatpush.bf16.msra.mxu3 %v2838_v9  ;;  %1730 = vmatpush.bf16.msrb.mxu1 %v2586_v10  ;;  %v3265_v9 = vld [vmem:[#allocation11 + $0x30] sm:$0xff]  ;;  %v3264_v10 = vld [vmem:[#allocation11 + $0x28] sm:$0xff] }
 0x10e   :  { %1743 = vmatpush.bf16.msrb.mxu2 %v2810_v15  ;;  %v3261_v15 = vld [vmem:[#allocation11 + $0x10] sm:$0xff] }
 0x111   :  { %1693 = vmatpush.bf16.msra.mxu3 %v2822_v19  ;;  %1731 = vmatpush.bf16.msrb.mxu1 %v2570_v24  ;;  %v3274_v19 = vld [vmem:[#allocation11 + $0x78] sm:$0xff] }
 0x112   :  { %1744 = vmatpush.bf16.msrb.mxu2 %v2794_v26  ;;  %v3666_v26 = vld [vmem:[#allocation10] sm:$0xf] }
 0x113   :  { %v829_v28 = vperm.slane %v3666_v26, 0 }
 0x114   :  { %1656 = vmatmul.bf16.vlgmr.msra.gmra.mxu1 %v3604_v4  ;;  %1618 = vmatmul.bf16.vlgmr.msrb.gmra.mxu3 %v3631_v32 }
 0x115   :  { %1762 = vmatpush.bf16.msrb.mxu3 %v2938_v29  ;;  %2084 = vmatpush.bf16.msra.mxu1 %v3274_v19  ;;  %v3270_v29 = vld [vmem:[#allocation11 + $0x58] sm:$0xff] }
 0x116   :  { %1745 = vmatpush.bf16.msrb.mxu2 %v2778_v44  ;;  %v3269_v44 = vld [vmem:[#allocation11 + $0x50] sm:$0xff] }
 0x119   :  { %1763 = vmatpush.bf16.msrb.mxu3 %v2922_v35  ;;  %2085 = vmatpush.bf16.msra.mxu1 %v3273_v21  ;;  %v3276_v21 = vld [vmem:[#allocation11 + $0x88] sm:$0xff] }
 0x11a   :  { %1746 = vmatpush.bf16.msrb.mxu2 %v2762_v40 }
 0x11c   :  { %1642 = vmatmul.bf16.gmra.mxu0 %v3609_v45  ;;  %1604 = vmatmul.bf16.gmra.mxu2 %v3637_v12 }
 0x11d   :  { %1764 = vmatpush.bf16.msrb.mxu3 %v2906_v42 }
 0x11e   :  { %1747 = vmatpush.bf16.msrb.mxu2 %v2746_v34 }
 0x121   :  { %1765 = vmatpush.bf16.msrb.mxu3 %v2890_v50 }
 0x122   :  { %1748 = vmatpush.bf16.msrb.mxu2 %v2730_v52 }
 0x124   :  { %1661 = vmatmul.bf16.gmra.mxu1 %v3616_v14  ;;  %1623 = vmatmul.bf16.gmra.mxu3 %v3642_v41 }
 0x125   :  { %1766 = vmatpush.bf16.msrb.mxu3 %v2874_v55 }
 0x126   :  { %1749 = vmatpush.bf16.msrb.mxu2 %v2714_v59 }
 0x129   :  { %1767 = vmatpush.bf16.msrb.mxu3 %v2858_v61 }
 0x12a   :  { %1750 = vmatpush.bf16.msrb.mxu2 %v2698_v0 }
 0x12c   :  { %1713 = vmatmul.bf16.vlgmr.msrb.gmra.mxu0 %v3599_v33  ;;  %1675 = vmatmul.bf16.vlgmr.msra.gmra.mxu2 %v3625_v63  ;;  %v3266_v33 = vld [vmem:[#allocation11 + $0x38] sm:$0xff] }
 0x12d   :  { %1768 = vmatpush.bf16.msrb.mxu3 %v2842_v5  ;;  %2065 = vmatpush.bf16.msra.mxu0 %v3266_v33 }
 0x12e   :  { %2103 = vmatpush.bf16.msra.mxu2 %v3282_v53 }
 0x131   :  { %1769 = vmatpush.bf16.msrb.mxu3 %v2826_v8  ;;  %2066 = vmatpush.bf16.msra.mxu0 %v3265_v9  ;;  %v3279_v8 = vld [vmem:[#allocation11 + $0xa0] sm:$0xff] }
 0x132   :  { %2104 = vmatpush.bf16.msra.mxu2 %v3281_v57 }
 0x134   :  { %1732 = vmatmul.bf16.vlgmr.msrb.gmra.mxu1 %v3604_v4  ;;  %1694 = vmatmul.bf16.vlgmr.msra.gmra.mxu3 %v3631_v32  ;;  %v3263_v4 = vld [vmem:[#allocation11 + $0x20] sm:$0xff] }
 0x135   :  { %2067 = vmatpush.bf16.msra.mxu0 %v3264_v10  ;;  %v830_v10 = vperm.slane %v3666_v26, 1 }
 0x136   :  { %2105 = vmatpush.bf16.msra.mxu2 %v3280_v62  ;;  %v3285_v62 = vld [vmem:[#allocation11 + $0xd0] sm:$0xff] }
 0x139   :  { %2068 = vmatpush.bf16.msra.mxu0 %v3263_v4  ;;  %v3278_v4 = vld [vmem:[#allocation11 + $0x98] sm:$0xff] }
 0x13a   :  { %2106 = vmatpush.bf16.msra.mxu2 %v3279_v8 }
 0x13c   :  { %1718 = vmatmul.bf16.gmra.mxu0 %v3609_v45  ;;  %1680 = vmatmul.bf16.gmra.mxu2 %v3637_v12  ;;  %v3262_v45 = vld [vmem:[#allocation11 + $0x18] sm:$0xff] }
 0x13d   :  { %2069 = vmatpush.bf16.msra.mxu0 %v3262_v45 }
 0x13e   :  { %2107 = vmatpush.bf16.msra.mxu2 %v3278_v4 }
 0x141   :  { %2070 = vmatpush.bf16.msra.mxu0 %v3261_v15 }
 0x144   :  { %1737 = vmatmul.bf16.gmra.mxu1 %v3616_v14  ;;  %1699 = vmatmul.bf16.gmra.mxu3 %v3642_v41 }
 0x145   :  { %2071 = vmatpush.bf16.msra.mxu0 %v3260_v17  ;;  %v3277_v17 = vld [vmem:[#allocation11 + $0x90] sm:$0xff] }
 0x146   :  { %2108 = vmatpush.bf16.msra.mxu2 %v3277_v17 }
 0x149   :  { %v1486_v11 = vpop.f32.mrf.mxu0  ;;  %2072 = vmatpush.bf16.msra.mxu0 %v3259_v18 }
 0x14a   :  { %2109 = vmatpush.bf16.msra.mxu2 %v3276_v21 }
 0x14c   :  { %1751 = vmatmul.bf16.vlgmr.msrb.gmra.mxu2 %v3625_v63 }
 0x151   :  { %v1505_v13 = vpop.f32.mrf.mxu1  ;;  %v1488_v14 = vpop.f32.mrf.mxu0 }
 0x152   :  { %v1489_v49 = vadd.f32 %v1488_v14, %v829_v28 }
 0x154   :  { %1770 = vmatmul.bf16.vlgmr.msrb.gmra.mxu3 %v3631_v32  ;;  %v3272_v32 = vld [vmem:[#allocation11 + $0x68] sm:$0xff] }
 0x155   :  { %2086 = vmatpush.bf16.msra.mxu1 %v3272_v32 }
 0x159   :  { %v1507_v16 = vpop.f32.mrf.mxu1  ;;  %v1491_v63 = vpop.f32.mrf.mxu0 }
 0x15a   :  { %v1508_v35 = vadd.f32 %v1507_v16, %v1489_v49  ;;  %v1492_v55 = vadd.f32 %v1491_v63, %v829_v28 }
 0x15c   :  { %1756 = vmatmul.bf16.gmra.mxu2 %v3637_v12  ;;  %v3271_v12 = vld [vmem:[#allocation11 + $0x60] sm:$0xff] }
 0x15d   :  { %2087 = vmatpush.bf16.msra.mxu1 %v3271_v12 }
 0x161   :  { %v1510_v20 = vpop.f32.mrf.mxu1  ;;  %v1493_v23 = vpop.f32.mrf.mxu0  ;;  %2088 = vmatpush.bf16.msra.mxu1 %v3270_v29  ;;  %v3275_v29 = vld [vmem:[#allocation11 + $0x80] sm:$0xff] }
 0x162   :  { %v1511_v58 = vadd.f32 %v1510_v20, %v1492_v55  ;;  %v1494_v59 = vadd.f32 %v1493_v23, %v829_v28  ;;  %2110 = vmatpush.bf16.msra.mxu2 %v3275_v29  ;;  %v831_v55 = vperm.slane %v3666_v26, 2 }
 0x164   :  { %1775 = vmatmul.bf16.gmra.mxu3 %v3642_v41  ;;  %v1487_v41 = vadd.f32 %v1486_v11, %v829_v28 }
 0x165   :  { %2089 = vmatpush.bf16.msra.mxu1 %v3269_v44  ;;  %v3290_v44 = vld [vmem:[#allocation11 + $0xf8] sm:$0xff] }
 0x166   :  { %v1506_v37 = vadd.f32 %v1505_v13, %v1487_v41  ;;  %2122 = vmatpush.bf16.msra.mxu3 %v3290_v44 }
 0x169   :  { %v1512_v27 = vpop.f32.mrf.mxu1  ;;  %v1562_v31 = vpop.f32.mrf.mxu0  ;;  %2090 = vmatpush.bf16.msra.mxu1 %v3268_v38 }
 0x16a   :  { %v1513_v60 = vadd.f32 %v1512_v27, %v1494_v59  ;;  %v1563_v15 = vadd.f32 %v1562_v31, %v830_v10 }
 0x16d   :  { %2091 = vmatpush.bf16.msra.mxu1 %v3267_v39 }
 0x16f   :  { %v1524_v24 = vpop.f32.mrf.mxu2 }
 0x170   :  { %v1525_v36 = vadd.f32 %v1524_v24, %v1506_v37 }
 0x171   :  { %v1581_v25 = vpop.f32.mrf.mxu1  ;;  %v1564_v50 = vpop.f32.mrf.mxu0 }
 0x172   :  { %v1582_v18 = vadd.f32 %v1581_v25, %v1563_v15  ;;  %v1565_v63 = vadd.f32 %v1564_v50, %v830_v10 }
 0x177   :  { %v1543_v30 = vpop.f32.mrf.mxu3  ;;  %v1526_v22 = vpop.f32.mrf.mxu2 }
 0x178   :  { %v1544_v40 = vadd.f32 %v1543_v30, %v1525_v36  ;;  %v1527_v42 = vadd.f32 %v1526_v22, %v1508_v35  ;;  %v3289_v35 = vld [vmem:[#allocation11 + $0xf0] sm:$0xff] }
 0x179   :  { %v1583_v52 = vpop.f32.mrf.mxu1  ;;  %v1567_v3 = vpop.f32.mrf.mxu0  ;;  %2123 = vmatpush.bf16.msra.mxu3 %v3289_v35 }
 0x17a   :  { %v1781_v47 = vmax.f32 %v1544_v40, 0.0  ;;  %v1584_v19 = vadd.f32 %v1583_v52, %v1565_v63  ;;  %v1568_v49 = vadd.f32 %v1567_v3, %v830_v10  ;;  %v3287_v52 = vld [vmem:[#allocation11 + $0xe0] sm:$0xff] }
 0x17f   :  { %v1545_v43 = vpop.f32.mrf.mxu3  ;;  %v1529_v34 = vpop.f32.mrf.mxu2 }
 0x180   :  { %v1546_v46 = vadd.f32 %v1545_v43, %v1527_v42  ;;  %v1530_v61 = vadd.f32 %v1529_v34, %v1511_v58  ;;  %v3288_v42 = vld [vmem:[#allocation11 + $0xe8] sm:$0xff]  ;;  %v3286_v58 = vld [vmem:[#allocation11 + $0xd8] sm:$0xff] }
 0x181   :  { %v1586_v2 = vpop.f32.mrf.mxu1  ;;  %v1569_v13 = vpop.f32.mrf.mxu0  ;;  %2124 = vmatpush.bf16.msra.mxu3 %v3288_v42 }
 0x182   :  { %v1785_v48 = vmax.f32 %v1546_v46, 0.0  ;;  %v1587_v36 = vadd.f32 %v1586_v2, %v1568_v49  ;;  %v1570_v38 = vadd.f32 %v1569_v13, %v830_v10  ;;  %v3284_v2 = vld [vmem:[#allocation11 + $0xc8] sm:$0xff]  ;;  %v3283_v13 = vld [vmem:[#allocation11 + $0xc0] sm:$0xff] }
 0x184   :  { %v1797_v51 = vpack.c.bf16 %v1785_v48, %v1781_v47 }
 0x185   :  { %2125 = vmatpush.bf16.msra.mxu3 %v3287_v52 }
 0x186   :  { %2073 = vmatmul.bf16.vlgmr.msra.gmra.mxu0 %v1797_v51 }
 0x187   :  { %v1548_v54 = vpop.f32.mrf.mxu3  ;;  %v1531_v56 = vpop.f32.mrf.mxu2 }
 0x188   :  { %v1549_v0 = vadd.f32 %v1548_v54, %v1530_v61  ;;  %v1532_v1 = vadd.f32 %v1531_v56, %v1513_v60 }
 0x189   :  { %v1588_v16 = vpop.f32.mrf.mxu1  ;;  %v1638_v28 = vpop.f32.mrf.mxu0  ;;  %2126 = vmatpush.bf16.msra.mxu3 %v3286_v58 }
 0x18a   :  { %v1789_v33 = vmax.f32 %v1549_v0, 0.0  ;;  %v1589_v43 = vadd.f32 %v1588_v16, %v1570_v38  ;;  %v1639_v61 = vadd.f32 %v1638_v28, %v831_v55 }
 0x18d   :  { %2127 = vmatpush.bf16.msra.mxu3 %v3285_v62 }
 0x18f   :  { %v1550_v5 = vpop.f32.mrf.mxu3  ;;  %v1600_v7 = vpop.f32.mrf.mxu2 }
 0x190   :  { %v1551_v6 = vadd.f32 %v1550_v5, %v1532_v1  ;;  %v1601_v20 = vadd.f32 %v1600_v7, %v1582_v18 }
 0x191   :  { %v1657_v22 = vpop.f32.mrf.mxu1  ;;  %v1640_v40 = vpop.f32.mrf.mxu0  ;;  %2128 = vmatpush.bf16.msra.mxu3 %v3284_v2 }
 0x192   :  { %v1793_v9 = vmax.f32 %v1551_v6, 0.0  ;;  %v1658_v0 = vadd.f32 %v1657_v22, %v1639_v61  ;;  %v1641_v1 = vadd.f32 %v1640_v40, %v831_v55 }
 0x194   :  { %v1801_v11 = vpack.c.bf16 %v1793_v9, %v1789_v33 }
 0x195   :  { %2129 = vmatpush.bf16.msra.mxu3 %v3283_v13 }
 0x196   :  { %2078 = vmatmul.bf16.gmra.mxu0 %v1801_v11 }
 0x197   :  { %v1619_v45 = vpop.f32.mrf.mxu3  ;;  %v1602_v14 = vpop.f32.mrf.mxu2 }
 0x198   :  { %v1620_v32 = vadd.f32 %v1619_v45, %v1601_v20  ;;  %v1603_v23 = vadd.f32 %v1602_v14, %v1584_v19 }
 0x199   :  { %v1659_v34 = vpop.f32.mrf.mxu1  ;;  %v1643_v57 = vpop.f32.mrf.mxu0 }
 0x19a   :  { %v1782_v30 = vmax.f32 %v1620_v32, 0.0  ;;  %v1660_v5 = vadd.f32 %v1659_v34, %v1641_v1  ;;  %v1644_v17 = vadd.f32 %v1643_v57, %v831_v55 }
 0x19f   :  { %v1621_v24 = vpop.f32.mrf.mxu3  ;;  %v1605_v12 = vpop.f32.mrf.mxu2 }
 0x1a0   :  { %v1622_v27 = vadd.f32 %v1621_v24, %v1603_v23  ;;  %v1606_v46 = vadd.f32 %v1605_v12, %v1587_v36 }
 0x1a1   :  { %v1662_v59 = vpop.f32.mrf.mxu1  ;;  %v1645_v33 = vpop.f32.mrf.mxu0 }
 0x1a2   :  { %v1786_v41 = vmax.f32 %v1622_v27, 0.0  ;;  %v1663_v19 = vadd.f32 %v1662_v59, %v1644_v17  ;;  %v1646_v20 = vadd.f32 %v1645_v33, %v831_v55 }
 0x1a4   :  { %v1798_v31 = vpack.c.bf16 %v1786_v41, %v1782_v30 }
 0x1a6   :  { %2092 = vmatmul.bf16.vlgmr.msra.gmra.mxu1 %v1798_v31  ;;  %v832_v31 = vperm.slane %v3666_v26, 3 }
 0x1a7   :  { %v1624_v37 = vpop.f32.mrf.mxu3  ;;  %v1607_v25 = vpop.f32.mrf.mxu2 }
 0x1a8   :  { %v1625_v39 = vadd.f32 %v1624_v37, %v1606_v46  ;;  %v1608_v47 = vadd.f32 %v1607_v25, %v1589_v43 }
 0x1a9   :  { %v1664_v4 = vpop.f32.mrf.mxu1  ;;  %v1714_v63 = vpop.f32.mrf.mxu0 }
 0x1aa   :  { %v1790_v53 = vmax.f32 %v1625_v39, 0.0  ;;  %v1665_v32 = vadd.f32 %v1664_v4, %v1646_v20  ;;  %v1715_v25 = vadd.f32 %v1714_v63, %v832_v31 }
 0x1af   :  { %v1626_v48 = vpop.f32.mrf.mxu3  ;;  %v1676_v51 = vpop.f32.mrf.mxu2 }
 0x1b0   :  { %v1627_v50 = vadd.f32 %v1626_v48, %v1608_v47  ;;  %v1677_v6 = vadd.f32 %v1676_v51, %v1658_v0 }
 0x1b1   :  { %v1733_v21 = vpop.f32.mrf.mxu1  ;;  %v1716_v22 = vpop.f32.mrf.mxu0 }
 0x1b2   :  { %v1794_v54 = vmax.f32 %v1627_v50, 0.0  ;;  %v1734_v36 = vadd.f32 %v1733_v21, %v1715_v25  ;;  %v1717_v38 = vadd.f32 %v1716_v22, %v832_v31 }
 0x1b4   :  { %v1802_v56 = vpack.c.bf16 %v1794_v54, %v1790_v53 }
 0x1b6   :  { %2097 = vmatmul.bf16.gmra.mxu1 %v1802_v56 }
 0x1b7   :  { %v1695_v60 = vpop.f32.mrf.mxu3  ;;  %v1678_v3 = vpop.f32.mrf.mxu2 }
 0x1b8   :  { %v1696_v7 = vadd.f32 %v1695_v60, %v1677_v6  ;;  %v1679_v8 = vadd.f32 %v1678_v3, %v1660_v5 }
 0x1b9   :  { %v1735_v37 = vpop.f32.mrf.mxu1  ;;  %v1719_v43 = vpop.f32.mrf.mxu0 }
 0x1ba   :  { %v1783_v45 = vmax.f32 %v1696_v7, 0.0  ;;  %v1736_v40 = vadd.f32 %v1735_v37, %v1717_v38  ;;  %v1720_v55 = vadd.f32 %v1719_v43, %v832_v31 }
 0x1bf   :  { %v1697_v9 = vpop.f32.mrf.mxu3  ;;  %v1681_v11 = vpop.f32.mrf.mxu2 }
 0x1c0   :  { %v1698_v10 = vadd.f32 %v1697_v9, %v1679_v8  ;;  %v1682_v23 = vadd.f32 %v1681_v11, %v1663_v19  ;;  %v3313_v11 = vld [vmem:[%s3687_s6] ss:$0 sm:$0xff]  ;;  %s3502_s6 = smov [#allocation13]  }
 0x1c1   :  { %v1738_v39 = vpop.f32.mrf.mxu1  ;;  %v1721_v53 = vpop.f32.mrf.mxu0  ;;  %s2153_s8 = sshll.u32 %s3502_s6, 4  ;;  %s2154_s8 = int_to_ptr.vmem [resolvable:$true] %s2153_s8 }
 0x1c2   :  { %v1787_v15 = vmax.f32 %v1698_v10, 0.0  ;;  %v1739_v57 = vadd.f32 %v1738_v39, %v1720_v55  ;;  %v1722_v58 = vadd.f32 %v1721_v53, %v832_v31 }
 0x1c4   :  { %v1799_v14 = vpack.c.bf16 %v1787_v15, %v1783_v45 }
 0x1c6   :  { %2111 = vmatmul.bf16.vlgmr.msra.gmra.mxu2 %v1799_v14 }
 0x1c7   :  { %v1700_v16 = vpop.f32.mrf.mxu3  ;;  %v1683_v18 = vpop.f32.mrf.mxu2 }
 0x1c8   :  { %v1701_v24 = vadd.f32 %v1700_v16, %v1682_v23  ;;  %v1684_v27 = vadd.f32 %v1683_v18, %v1665_v32 }
 0x1c9   :  { %v1740_v56 = vpop.f32.mrf.mxu1 }
 0x1ca   :  { %v1791_v30 = vmax.f32 %v1701_v24, 0.0  ;;  %v1741_v60 = vadd.f32 %v1740_v56, %v1722_v58 }
 0x1cf   :  { %v1702_v12 = vpop.f32.mrf.mxu3  ;;  %v1752_v29 = vpop.f32.mrf.mxu2 }
 0x1d0   :  { %v1703_v28 = vadd.f32 %v1702_v12, %v1684_v27  ;;  %v1753_v42 = vadd.f32 %v1752_v29, %v1734_v36 }
 0x1d2   :  { %v1795_v41 = vmax.f32 %v1703_v28, 0.0 }
 0x1d4   :  { %v1803_v44 = vpack.c.bf16 %v1795_v41, %v1791_v30 }
 0x1d6   :  { %2116 = vmatmul.bf16.gmra.mxu2 %v1803_v44 }
 0x1d7   :  { %v1771_v49 = vpop.f32.mrf.mxu3  ;;  %v1754_v35 = vpop.f32.mrf.mxu2 }
 0x1d8   :  { %v1772_v46 = vadd.f32 %v1771_v49, %v1753_v42  ;;  %v1755_v34 = vadd.f32 %v1754_v35, %v1736_v40 }
 0x1da   :  { %v1784_v51 = vmax.f32 %v1772_v46, 0.0 }
 0x1df   :  { %v1773_v47 = vpop.f32.mrf.mxu3  ;;  %v1757_v50 = vpop.f32.mrf.mxu2 }
 0x1e0   :  { %v1774_v48 = vadd.f32 %v1773_v47, %v1755_v34  ;;  %v1758_v61 = vadd.f32 %v1757_v50, %v1739_v57 }
 0x1e2   :  { %v1788_v52 = vmax.f32 %v1774_v48, 0.0 }
 0x1e4   :  { %v1800_v26 = vpack.c.bf16 %v1788_v52, %v1784_v51 }
 0x1e6   :  { %2130 = vmatmul.bf16.vlgmr.msra.gmra.mxu3 %v1800_v26 }
 0x1e7   :  { %v1776_v54 = vpop.f32.mrf.mxu3  ;;  %v1759_v59 = vpop.f32.mrf.mxu2 }
 0x1e8   :  { %v1777_v3 = vadd.f32 %v1776_v54, %v1758_v61  ;;  %v1760_v62 = vadd.f32 %v1759_v59, %v1741_v60 }
 0x1ea   :  { %v1792_v2 = vmax.f32 %v1777_v3, 0.0 }
 0x1ef   :  { %v1778_v0 = vpop.f32.mrf.mxu3 }
 0x1f0   :  { %v1779_v1 = vadd.f32 %v1778_v0, %v1760_v62 }
 0x1f2   :  { %v1796_v5 = vmax.f32 %v1779_v1, 0.0 }
 0x1f4   :  { %v1804_v6 = vpack.c.bf16 %v1796_v5, %v1792_v2 }
 0x1f6   :  { %2135 = vmatmul.bf16.gmra.mxu3 %v1804_v6 }
 0x203   :  { %v2074_v7 = vpop.f32.mrf.mxu0 }
 0x204   :  { %v2075_v45 = vadd.f32 %v3313_v11, %v2074_v7 }
 0x20b   :  { %v2076_v9 = vpop.f32.mrf.mxu0 }
 0x20c   :  { %v2077_v15 = vadd.f32 %v3313_v11, %v2076_v9 }
 0x213   :  { %v2079_v17 = vpop.f32.mrf.mxu0 }
 0x214   :  { %v2080_v29 = vadd.f32 %v3313_v11, %v2079_v17 }
 0x21b   :  { %v2081_v27 = vpop.f32.mrf.mxu0 }
 0x21c   :  { %v2082_v30 = vadd.f32 %v3313_v11, %v2081_v27 }
 0x223   :  { %v2093_v8 = vpop.f32.mrf.mxu1 }
 0x224   :  { %v2094_v14 = vadd.f32 %v2093_v8, %v2075_v45 }
 0x22b   :  { %v2095_v10 = vpop.f32.mrf.mxu1 }
 0x22c   :  { %v2096_v16 = vadd.f32 %v2095_v10, %v2077_v15 }
 0x233   :  { %v2098_v19 = vpop.f32.mrf.mxu1 }
 0x234   :  { %v2099_v22 = vadd.f32 %v2098_v19, %v2080_v29 }
 0x23b   :  { %v2100_v28 = vpop.f32.mrf.mxu1 }
 0x23c   :  { %v2101_v31 = vadd.f32 %v2100_v28, %v2082_v30 }
 0x249   :  { %v2112_v33 = vpop.f32.mrf.mxu2 }
 0x24a   :  { %v2113_v18 = vadd.f32 %v2112_v33, %v2094_v14 }
 0x251   :  { %v2114_v4 = vpop.f32.mrf.mxu2 }
 0x252   :  { %v2115_v63 = vadd.f32 %v2114_v4, %v2096_v16 }
 0x259   :  { %v2117_v23 = vpop.f32.mrf.mxu2 }
 0x25a   :  { %v2118_v44 = vadd.f32 %v2117_v23, %v2099_v22 }
 0x261   :  { %v2119_v41 = vpop.f32.mrf.mxu2 }
 0x262   :  { %v2120_v37 = vadd.f32 %v2119_v41, %v2101_v31 }
 0x269   :  { %v2131_v13 = vpop.f32.mrf.mxu3 }
 0x26a   :  { %v2132_v21 = vadd.f32 %v2131_v13, %v2113_v18 }
 0x271   :  { %v2133_v20 = vpop.f32.mrf.mxu3 }
 0x272   :  { %v2134_v32 = vadd.f32 %v2133_v20, %v2115_v63 }
 0x274   :  { %v3294_v24 = vpack.c.bf16 %v2134_v32, %v2132_v21 }
 0x276   :  { %3295 = vst [vmem:[#allocation13] sm:$0xff] %v3294_v24  }
 0x279   :  { %v2136_v12 = vpop.f32.mrf.mxu3 }
 0x27a   :  { %v2137_v25 = vadd.f32 %v2136_v12, %v2118_v44 }
 0x281   :  { %v2138_v49 = vpop.f32.mrf.mxu3 }
 0x282   :  { %v2139_v35 = vadd.f32 %v2138_v49, %v2120_v37 }
 0x284   :  { %v3299_v36 = vpack.c.bf16 %v2139_v35, %v2137_v25 }
 0x286   :  { %3301 = vst [vmem:[#allocation13 + $0x8] sm:$0xff] %v3299_v36  }
 0x287   :  { %2161 = dma.vmem_to_hbm [thread:$0]  %s2154_s8, 256, %s2156_s11, [#allocation4], %s3500_s29, %s3500_s29, %s3501_s30  }
 0x288   :  { %3490 = dma.done.wait [#allocation4], 256  }
 0x289   :  { %3491 = vsyncadd [#allocation4], 4294967040 }
 0x28a   :  { %2166 = vsyncpa [#allocation3], 1 }
 0x28b   :  { %2167 = vsyncpa [#allocation6], 1 }
 0x28c   :  { %2168 = vsyncpa [#allocation9], 1 }
 0x28d   :  { %2169 = vsyncpa [#allocation12], 1 }
 0x28e   :  { %2170 = vsyncpa [#allocation4], 1 }

</bundles_post_ra>
